<compile_context>
chip_gen: v6e
topology: v6e:2x2x1
jax: 0.10.0
libtpu: 0.0.40
codegen_flags: <defaults>
</compile_context>

<pallas_src>
import functools

import jax
import jax.numpy as jnp
from jax.experimental import pallas as pl
from jax.experimental.pallas import tpu as pltpu


# Off-center taps of the 3x3 stencil, in a fixed order shared by the wrapper
# (mask construction) and the kernel (shift / weight-tap selection).
_OFF_CENTER = tuple((dy, dx) for dy in (-1, 0, 1) for dx in (-1, 0, 1)
                    if not (dy == 0 and dx == 0))
_CENTER_TAP = 4  # (dy, dx) == (0, 0) -> tap index (0+1)*3 + (0+1)


def _resblock_kernel(masks_ref, x_ref, w1_ref, b1_ref, w2_ref, b2_ref, o_ref,
                     *, W):
    """Fused ResBlock on a (C, L) tile, L = N*H*W folded onto the lane axis."""
    x = x_ref[...]                                  # (C, L), native dtype
    C, L = x.shape

    # Static tap metadata: (weight tap index, mask row, non-negative lane shift).
    taps = []
    for row, (dy, dx) in enumerate(_OFF_CENTER):
        tap = (dy + 1) * 3 + (dx + 1)
        shift = (-(dy * W + dx)) % L                # roll is cyclic mod L
        taps.append((tap, row, shift))

    def conv3x3(a, w_ref_, b_ref_):
        """3x3 'same' conv of a (C, L) tile; f32 accumulation on the MXU."""
        # Center tap needs no roll / no mask; fold the bias into the acc init.
        acc = jnp.dot(w_ref_[_CENTER_TAP], a,
                      preferred_element_type=jnp.float32)
        acc = acc + b_ref_[...].astype(jnp.float32)           # (C,1) broadcast
        for tap, row, shift in taps:
            s = pltpu.roll(a, shift, axis=1)                   # XLU lane rotate
            s = s * masks_ref[row]                             # zero wrapped lanes
            acc = acc + jnp.dot(w_ref_[tap], s,                # (C,C) @ (C,L)
                                preferred_element_type=jnp.float32)
        return acc

    # conv1 + bias + exact (erf) GELU (torch.nn.GELU default).
    h = conv3x3(x, w1_ref, b1_ref)
    h = 0.5 * h * (1.0 + jax.lax.erf(h * jnp.float32(0.7071067811865476)))
    h = h.astype(x.dtype)

    # conv2 + bias + residual.
    y = conv3x3(h, w2_ref, b2_ref) + x.astype(jnp.float32)
    o_ref[...] = y.astype(o_ref.dtype)              # lane-dense (C, L) store


@jax.jit
def resblock_forward(x_nchw, w1, b1, w2, b2):
    """ResBlock forward. x: (N,C,H,W) NCHW; w: (C_out,C_in,3,3) OIHW; b: (C,)."""
    N, C, H, W = x_nchw.shape
    HW = H * W
    L = N * HW

    # Fold batch onto the lane axis: (C, N*HW). Tiny one-time relayout in XLA.
    x_cl = jnp.transpose(x_nchw.reshape(N, C, HW), (1, 0, 2)).reshape(C, L)

    # Per-tap (C_out, C_in) weight slabs; tap t = ky*3 + kx.
    w1_taps = jnp.transpose(w1, (2, 3, 0, 1)).reshape(9, C, C)
    w2_taps = jnp.transpose(w2, (2, 3, 0, 1)).reshape(9, C, C)
    b1c = b1.reshape(C, 1)
    b2c = b2.reshape(C, 1)

    # Border-validity masks for the 8 off-center taps, precomputed once here
    # (hoisted out of the kernel).  Lane q maps to within-image position q mod HW.
    p = jnp.arange(HW, dtype=jnp.int32)
    hh = p // W
    ww = p - hh * W
    row_lo, row_hi = hh >= 1, hh <= H - 2
    col_lo, col_hi = ww >= 1, ww <= W - 2
    rows = []
    for dy, dx in _OFF_CENTER:
        m = jnp.ones((HW,), jnp.bool_)
        if dy == -1:
            m = m & row_lo
        elif dy == 1:
            m = m & row_hi
        if dx == -1:
            m = m & col_lo
        elif dx == 1:
            m = m & col_hi
        rows.append(m)
    masks = jnp.tile(jnp.stack(rows), (1, N)).astype(x_nchw.dtype)
    masks = masks.reshape(len(_OFF_CENTER), 1, L)          # (8, 1, L)

    kernel = functools.partial(_resblock_kernel, W=W)

    # Single grid step: every operand is a few KiB and sits fully resident in
    # VMEM (default full-array blocks), so no BlockSpecs / grid are needed.
    out = pl.pallas_call(
        kernel,
        out_shape=jax.ShapeDtypeStruct((C, L), x_nchw.dtype),
    )(masks, x_cl, w1_taps, b1c, w2_taps, b2c)

    # Back to NCHW (tiny relayout).
    return jnp.transpose(out.reshape(C, N, HW), (1, 0, 2)).reshape(N, C, H, W)


def _ref_forward(x, w1, b1, w2, b2):
    """Pure-JAX reference (lax conv, NCHW/OIHW) for verification."""
    dn = ("NCHW", "OIHW", "NCHW")
    h = jax.lax.conv_general_dilated(x, w1, (1, 1), "SAME", dimension_numbers=dn)
    h = h + b1.reshape(1, -1, 1, 1)
    h = jax.nn.gelu(h, approximate=False)
    y = jax.lax.conv_general_dilated(h, w2, (1, 1), "SAME", dimension_numbers=dn)
    y = y + b2.reshape(1, -1, 1, 1) + x
    return y


if __name__ == "__main__":
    # Small deterministic problem matching the PyTorch module: NCHW, C=4, 16x16.
    N, C, H, W = 2, 4, 16, 16
    key = jax.random.PRNGKey(0)
    kx, kw1, kb1, kw2, kb2 = jax.random.split(key, 5)

    x = jax.random.normal(kx, (N, C, H, W), dtype=jnp.float32)

    # PyTorch-like uniform(-1/sqrt(fan_in), +1/sqrt(fan_in)) init, OIHW layout.
    fan_in = C * 3 * 3
    bound = 1.0 / (fan_in ** 0.5)
    w1 = jax.random.uniform(kw1, (C, C, 3, 3), jnp.float32, -bound, bound)
    b1 = jax.random.uniform(kb1, (C,), jnp.float32, -bound, bound)
    w2 = jax.random.uniform(kw2, (C, C, 3, 3), jnp.float32, -bound, bound)
    b2 = jax.random.uniform(kb2, (C,), jnp.float32, -bound, bound)

    out = jax.block_until_ready(resblock_forward(x, w1, b1, w2, b2))
    ref = jax.block_until_ready(_ref_forward(x, w1, b1, w2, b2))

    assert out.shape == (N, C, H, W)
    max_err = jnp.max(jnp.abs(out - ref))
    assert jnp.allclose(out, ref, atol=1e-4, rtol=1e-4), f"max abs err = {max_err}"

    print("KERNEL_OK")
</pallas_src>

<mosaic_0001>
module attributes {stable_mosaic.version = 11 : i64} {
  func.func @_resblock_kernel(%arg0: memref<8x1x512xf32, #tpu.memory_space<vmem>>, %arg1: memref<4x512xf32, #tpu.memory_space<vmem>>, %arg2: memref<9x4x4xf32, #tpu.memory_space<vmem>>, %arg3: memref<4x1xf32, #tpu.memory_space<vmem>>, %arg4: memref<9x4x4xf32, #tpu.memory_space<vmem>>, %arg5: memref<4x1xf32, #tpu.memory_space<vmem>>, %arg6: memref<4x512xf32, #tpu.memory_space<vmem>>) attributes {dimension_semantics = [], scalar_prefetch = 0 : i64, scratch_operands = 0 : i64, tpu.core_type = #tpu.core_type<tc>} {
    %c0 = arith.constant 0 : index
    %c0_0 = arith.constant 0 : index
    %0 = vector.load %arg1[%c0, %c0_0] : memref<4x512xf32, #tpu.memory_space<vmem>>, vector<4x512xf32>
    %c4 = arith.constant 4 : index
    %c0_1 = arith.constant 0 : index
    %c0_2 = arith.constant 0 : index
    %1 = vector.load %arg2[%c4, %c0_1, %c0_2] : memref<9x4x4xf32, #tpu.memory_space<vmem>>, vector<1x4x4xf32>
    %2 = vector.shape_cast %1 : vector<1x4x4xf32> to vector<4x4xf32>
    %cst = arith.constant dense<0.000000e+00> : vector<4x512xf32>
    %3 = tpu.matmul %2, %0, %cst {dimension_numbers = #tpu.dot_dimension_numbers<[1], [0], [0], [1], [0, 0, 1, 1], [], []>} : vector<4x4xf32>, vector<4x512xf32>, vector<4x512xf32> -> vector<4x512xf32>
    %c0_3 = arith.constant 0 : index
    %c0_4 = arith.constant 0 : index
    %4 = vector.load %arg3[%c0_3, %c0_4] : memref<4x1xf32, #tpu.memory_space<vmem>>, vector<4x1xf32>
    %5 = vector.broadcast %4 : vector<4x1xf32> to vector<4x512xf32>
    %6 = arith.addf %3, %5 : vector<4x512xf32>
    %c17_i32 = arith.constant 17 : i32
    %7 = tpu.dynamic_rotate %0 by %c17_i32 dim 1 : vector<4x512xf32>, i32 -> vector<4x512xf32>
    %c0_5 = arith.constant 0 : index
    %c0_6 = arith.constant 0 : index
    %c0_7 = arith.constant 0 : index
    %8 = vector.load %arg0[%c0_5, %c0_6, %c0_7] : memref<8x1x512xf32, #tpu.memory_space<vmem>>, vector<1x1x512xf32>
    %9 = vector.shape_cast %8 : vector<1x1x512xf32> to vector<1x512xf32>
    %10 = vector.broadcast %9 : vector<1x512xf32> to vector<4x512xf32>
    %11 = arith.mulf %7, %10 : vector<4x512xf32>
    %c0_8 = arith.constant 0 : index
    %c0_9 = arith.constant 0 : index
    %c0_10 = arith.constant 0 : index
    %12 = vector.load %arg2[%c0_8, %c0_9, %c0_10] : memref<9x4x4xf32, #tpu.memory_space<vmem>>, vector<1x4x4xf32>
    %13 = vector.shape_cast %12 : vector<1x4x4xf32> to vector<4x4xf32>
    %cst_11 = arith.constant dense<0.000000e+00> : vector<4x512xf32>
    %14 = tpu.matmul %13, %11, %cst_11 {dimension_numbers = #tpu.dot_dimension_numbers<[1], [0], [0], [1], [0, 0, 1, 1], [], []>} : vector<4x4xf32>, vector<4x512xf32>, vector<4x512xf32> -> vector<4x512xf32>
    %15 = arith.addf %6, %14 : vector<4x512xf32>
    %c16_i32 = arith.constant 16 : i32
    %16 = tpu.dynamic_rotate %0 by %c16_i32 dim 1 : vector<4x512xf32>, i32 -> vector<4x512xf32>
    %c1 = arith.constant 1 : index
    %c0_12 = arith.constant 0 : index
    %c0_13 = arith.constant 0 : index
    %17 = vector.load %arg0[%c1, %c0_12, %c0_13] : memref<8x1x512xf32, #tpu.memory_space<vmem>>, vector<1x1x512xf32>
    %18 = vector.shape_cast %17 : vector<1x1x512xf32> to vector<1x512xf32>
    %19 = vector.broadcast %18 : vector<1x512xf32> to vector<4x512xf32>
    %20 = arith.mulf %16, %19 : vector<4x512xf32>
    %c1_14 = arith.constant 1 : index
    %c0_15 = arith.constant 0 : index
    %c0_16 = arith.constant 0 : index
    %21 = vector.load %arg2[%c1_14, %c0_15, %c0_16] : memref<9x4x4xf32, #tpu.memory_space<vmem>>, vector<1x4x4xf32>
    %22 = vector.shape_cast %21 : vector<1x4x4xf32> to vector<4x4xf32>
    %cst_17 = arith.constant dense<0.000000e+00> : vector<4x512xf32>
    %23 = tpu.matmul %22, %20, %cst_17 {dimension_numbers = #tpu.dot_dimension_numbers<[1], [0], [0], [1], [0, 0, 1, 1], [], []>} : vector<4x4xf32>, vector<4x512xf32>, vector<4x512xf32> -> vector<4x512xf32>
    %24 = arith.addf %15, %23 : vector<4x512xf32>
    %c15_i32 = arith.constant 15 : i32
    %25 = tpu.dynamic_rotate %0 by %c15_i32 dim 1 : vector<4x512xf32>, i32 -> vector<4x512xf32>
    %c2 = arith.constant 2 : index
    %c0_18 = arith.constant 0 : index
    %c0_19 = arith.constant 0 : index
    %26 = vector.load %arg0[%c2, %c0_18, %c0_19] : memref<8x1x512xf32, #tpu.memory_space<vmem>>, vector<1x1x512xf32>
    %27 = vector.shape_cast %26 : vector<1x1x512xf32> to vector<1x512xf32>
    %28 = vector.broadcast %27 : vector<1x512xf32> to vector<4x512xf32>
    %29 = arith.mulf %25, %28 : vector<4x512xf32>
    %c2_20 = arith.constant 2 : index
    %c0_21 = arith.constant 0 : index
    %c0_22 = arith.constant 0 : index
    %30 = vector.load %arg2[%c2_20, %c0_21, %c0_22] : memref<9x4x4xf32, #tpu.memory_space<vmem>>, vector<1x4x4xf32>
    %31 = vector.shape_cast %30 : vector<1x4x4xf32> to vector<4x4xf32>
    %cst_23 = arith.constant dense<0.000000e+00> : vector<4x512xf32>
    %32 = tpu.matmul %31, %29, %cst_23 {dimension_numbers = #tpu.dot_dimension_numbers<[1], [0], [0], [1], [0, 0, 1, 1], [], []>} : vector<4x4xf32>, vector<4x512xf32>, vector<4x512xf32> -> vector<4x512xf32>
    %33 = arith.addf %24, %32 : vector<4x512xf32>
    %c1_i32 = arith.constant 1 : i32
    %34 = tpu.dynamic_rotate %0 by %c1_i32 dim 1 : vector<4x512xf32>, i32 -> vector<4x512xf32>
    %c3 = arith.constant 3 : index
    %c0_24 = arith.constant 0 : index
    %c0_25 = arith.constant 0 : index
    %35 = vector.load %arg0[%c3, %c0_24, %c0_25] : memref<8x1x512xf32, #tpu.memory_space<vmem>>, vector<1x1x512xf32>
    %36 = vector.shape_cast %35 : vector<1x1x512xf32> to vector<1x512xf32>
    %37 = vector.broadcast %36 : vector<1x512xf32> to vector<4x512xf32>
    %38 = arith.mulf %34, %37 : vector<4x512xf32>
    %c3_26 = arith.constant 3 : index
    %c0_27 = arith.constant 0 : index
    %c0_28 = arith.constant 0 : index
    %39 = vector.load %arg2[%c3_26, %c0_27, %c0_28] : memref<9x4x4xf32, #tpu.memory_space<vmem>>, vector<1x4x4xf32>
    %40 = vector.shape_cast %39 : vector<1x4x4xf32> to vector<4x4xf32>
    %cst_29 = arith.constant dense<0.000000e+00> : vector<4x512xf32>
    %41 = tpu.matmul %40, %38, %cst_29 {dimension_numbers = #tpu.dot_dimension_numbers<[1], [0], [0], [1], [0, 0, 1, 1], [], []>} : vector<4x4xf32>, vector<4x512xf32>, vector<4x512xf32> -> vector<4x512xf32>
    %42 = arith.addf %33, %41 : vector<4x512xf32>
    %c511_i32 = arith.constant 511 : i32
    %43 = tpu.dynamic_rotate %0 by %c511_i32 dim 1 : vector<4x512xf32>, i32 -> vector<4x512xf32>
    %c4_30 = arith.constant 4 : index
    %c0_31 = arith.constant 0 : index
    %c0_32 = arith.constant 0 : index
    %44 = vector.load %arg0[%c4_30, %c0_31, %c0_32] : memref<8x1x512xf32, #tpu.memory_space<vmem>>, vector<1x1x512xf32>
    %45 = vector.shape_cast %44 : vector<1x1x512xf32> to vector<1x512xf32>
    %46 = vector.broadcast %45 : vector<1x512xf32> to vector<4x512xf32>
    %47 = arith.mulf %43, %46 : vector<4x512xf32>
    %c5 = arith.constant 5 : index
    %c0_33 = arith.constant 0 : index
    %c0_34 = arith.constant 0 : index
    %48 = vector.load %arg2[%c5, %c0_33, %c0_34] : memref<9x4x4xf32, #tpu.memory_space<vmem>>, vector<1x4x4xf32>
    %49 = vector.shape_cast %48 : vector<1x4x4xf32> to vector<4x4xf32>
    %cst_35 = arith.constant dense<0.000000e+00> : vector<4x512xf32>
    %50 = tpu.matmul %49, %47, %cst_35 {dimension_numbers = #tpu.dot_dimension_numbers<[1], [0], [0], [1], [0, 0, 1, 1], [], []>} : vector<4x4xf32>, vector<4x512xf32>, vector<4x512xf32> -> vector<4x512xf32>
    %51 = arith.addf %42, %50 : vector<4x512xf32>
    %c497_i32 = arith.constant 497 : i32
    %52 = tpu.dynamic_rotate %0 by %c497_i32 dim 1 : vector<4x512xf32>, i32 -> vector<4x512xf32>
    %c5_36 = arith.constant 5 : index
    %c0_37 = arith.constant 0 : index
    %c0_38 = arith.constant 0 : index
    %53 = vector.load %arg0[%c5_36, %c0_37, %c0_38] : memref<8x1x512xf32, #tpu.memory_space<vmem>>, vector<1x1x512xf32>
    %54 = vector.shape_cast %53 : vector<1x1x512xf32> to vector<1x512xf32>
    %55 = vector.broadcast %54 : vector<1x512xf32> to vector<4x512xf32>
    %56 = arith.mulf %52, %55 : vector<4x512xf32>
    %c6 = arith.constant 6 : index
    %c0_39 = arith.constant 0 : index
    %c0_40 = arith.constant 0 : index
    %57 = vector.load %arg2[%c6, %c0_39, %c0_40] : memref<9x4x4xf32, #tpu.memory_space<vmem>>, vector<1x4x4xf32>
    %58 = vector.shape_cast %57 : vector<1x4x4xf32> to vector<4x4xf32>
    %cst_41 = arith.constant dense<0.000000e+00> : vector<4x512xf32>
    %59 = tpu.matmul %58, %56, %cst_41 {dimension_numbers = #tpu.dot_dimension_numbers<[1], [0], [0], [1], [0, 0, 1, 1], [], []>} : vector<4x4xf32>, vector<4x512xf32>, vector<4x512xf32> -> vector<4x512xf32>
    %60 = arith.addf %51, %59 : vector<4x512xf32>
    %c496_i32 = arith.constant 496 : i32
    %61 = tpu.dynamic_rotate %0 by %c496_i32 dim 1 : vector<4x512xf32>, i32 -> vector<4x512xf32>
    %c6_42 = arith.constant 6 : index
    %c0_43 = arith.constant 0 : index
    %c0_44 = arith.constant 0 : index
    %62 = vector.load %arg0[%c6_42, %c0_43, %c0_44] : memref<8x1x512xf32, #tpu.memory_space<vmem>>, vector<1x1x512xf32>
    %63 = vector.shape_cast %62 : vector<1x1x512xf32> to vector<1x512xf32>
    %64 = vector.broadcast %63 : vector<1x512xf32> to vector<4x512xf32>
    %65 = arith.mulf %61, %64 : vector<4x512xf32>
    %c7 = arith.constant 7 : index
    %c0_45 = arith.constant 0 : index
    %c0_46 = arith.constant 0 : index
    %66 = vector.load %arg2[%c7, %c0_45, %c0_46] : memref<9x4x4xf32, #tpu.memory_space<vmem>>, vector<1x4x4xf32>
    %67 = vector.shape_cast %66 : vector<1x4x4xf32> to vector<4x4xf32>
    %cst_47 = arith.constant dense<0.000000e+00> : vector<4x512xf32>
    %68 = tpu.matmul %67, %65, %cst_47 {dimension_numbers = #tpu.dot_dimension_numbers<[1], [0], [0], [1], [0, 0, 1, 1], [], []>} : vector<4x4xf32>, vector<4x512xf32>, vector<4x512xf32> -> vector<4x512xf32>
    %69 = arith.addf %60, %68 : vector<4x512xf32>
    %c495_i32 = arith.constant 495 : i32
    %70 = tpu.dynamic_rotate %0 by %c495_i32 dim 1 : vector<4x512xf32>, i32 -> vector<4x512xf32>
    %c7_48 = arith.constant 7 : index
    %c0_49 = arith.constant 0 : index
    %c0_50 = arith.constant 0 : index
    %71 = vector.load %arg0[%c7_48, %c0_49, %c0_50] : memref<8x1x512xf32, #tpu.memory_space<vmem>>, vector<1x1x512xf32>
    %72 = vector.shape_cast %71 : vector<1x1x512xf32> to vector<1x512xf32>
    %73 = vector.broadcast %72 : vector<1x512xf32> to vector<4x512xf32>
    %74 = arith.mulf %70, %73 : vector<4x512xf32>
    %c8 = arith.constant 8 : index
    %c0_51 = arith.constant 0 : index
    %c0_52 = arith.constant 0 : index
    %75 = vector.load %arg2[%c8, %c0_51, %c0_52] : memref<9x4x4xf32, #tpu.memory_space<vmem>>, vector<1x4x4xf32>
    %76 = vector.shape_cast %75 : vector<1x4x4xf32> to vector<4x4xf32>
    %cst_53 = arith.constant dense<0.000000e+00> : vector<4x512xf32>
    %77 = tpu.matmul %76, %74, %cst_53 {dimension_numbers = #tpu.dot_dimension_numbers<[1], [0], [0], [1], [0, 0, 1, 1], [], []>} : vector<4x4xf32>, vector<4x512xf32>, vector<4x512xf32> -> vector<4x512xf32>
    %78 = arith.addf %69, %77 : vector<4x512xf32>
    %cst_54 = arith.constant 5.000000e-01 : f32
    %79 = vector.broadcast %cst_54 : f32 to vector<4x512xf32>
    %80 = arith.mulf %79, %78 : vector<4x512xf32>
    %cst_55 = arith.constant 0.707106769 : f32
    %81 = vector.broadcast %cst_55 : f32 to vector<4x512xf32>
    %82 = arith.mulf %78, %81 : vector<4x512xf32>
    %83 = math.erf %82 : vector<4x512xf32>
    %cst_56 = arith.constant 1.000000e+00 : f32
    %84 = vector.broadcast %cst_56 : f32 to vector<4x512xf32>
    %85 = arith.addf %84, %83 : vector<4x512xf32>
    %86 = arith.mulf %80, %85 : vector<4x512xf32>
    %c4_57 = arith.constant 4 : index
    %c0_58 = arith.constant 0 : index
    %c0_59 = arith.constant 0 : index
    %87 = vector.load %arg4[%c4_57, %c0_58, %c0_59] : memref<9x4x4xf32, #tpu.memory_space<vmem>>, vector<1x4x4xf32>
    %88 = vector.shape_cast %87 : vector<1x4x4xf32> to vector<4x4xf32>
    %cst_60 = arith.constant dense<0.000000e+00> : vector<4x512xf32>
    %89 = tpu.matmul %88, %86, %cst_60 {dimension_numbers = #tpu.dot_dimension_numbers<[1], [0], [0], [1], [0, 0, 1, 1], [], []>} : vector<4x4xf32>, vector<4x512xf32>, vector<4x512xf32> -> vector<4x512xf32>
    %c0_61 = arith.constant 0 : index
    %c0_62 = arith.constant 0 : index
    %90 = vector.load %arg5[%c0_61, %c0_62] : memref<4x1xf32, #tpu.memory_space<vmem>>, vector<4x1xf32>
    %91 = vector.broadcast %90 : vector<4x1xf32> to vector<4x512xf32>
    %92 = arith.addf %89, %91 : vector<4x512xf32>
    %c17_i32_63 = arith.constant 17 : i32
    %93 = tpu.dynamic_rotate %86 by %c17_i32_63 dim 1 : vector<4x512xf32>, i32 -> vector<4x512xf32>
    %c0_64 = arith.constant 0 : index
    %c0_65 = arith.constant 0 : index
    %c0_66 = arith.constant 0 : index
    %94 = vector.load %arg0[%c0_64, %c0_65, %c0_66] : memref<8x1x512xf32, #tpu.memory_space<vmem>>, vector<1x1x512xf32>
    %95 = vector.shape_cast %94 : vector<1x1x512xf32> to vector<1x512xf32>
    %96 = vector.broadcast %95 : vector<1x512xf32> to vector<4x512xf32>
    %97 = arith.mulf %93, %96 : vector<4x512xf32>
    %c0_67 = arith.constant 0 : index
    %c0_68 = arith.constant 0 : index
    %c0_69 = arith.constant 0 : index
    %98 = vector.load %arg4[%c0_67, %c0_68, %c0_69] : memref<9x4x4xf32, #tpu.memory_space<vmem>>, vector<1x4x4xf32>
    %99 = vector.shape_cast %98 : vector<1x4x4xf32> to vector<4x4xf32>
    %cst_70 = arith.constant dense<0.000000e+00> : vector<4x512xf32>
    %100 = tpu.matmul %99, %97, %cst_70 {dimension_numbers = #tpu.dot_dimension_numbers<[1], [0], [0], [1], [0, 0, 1, 1], [], []>} : vector<4x4xf32>, vector<4x512xf32>, vector<4x512xf32> -> vector<4x512xf32>
    %101 = arith.addf %92, %100 : vector<4x512xf32>
    %c16_i32_71 = arith.constant 16 : i32
    %102 = tpu.dynamic_rotate %86 by %c16_i32_71 dim 1 : vector<4x512xf32>, i32 -> vector<4x512xf32>
    %c1_72 = arith.constant 1 : index
    %c0_73 = arith.constant 0 : index
    %c0_74 = arith.constant 0 : index
    %103 = vector.load %arg0[%c1_72, %c0_73, %c0_74] : memref<8x1x512xf32, #tpu.memory_space<vmem>>, vector<1x1x512xf32>
    %104 = vector.shape_cast %103 : vector<1x1x512xf32> to vector<1x512xf32>
    %105 = vector.broadcast %104 : vector<1x512xf32> to vector<4x512xf32>
    %106 = arith.mulf %102, %105 : vector<4x512xf32>
    %c1_75 = arith.constant 1 : index
    %c0_76 = arith.constant 0 : index
    %c0_77 = arith.constant 0 : index
    %107 = vector.load %arg4[%c1_75, %c0_76, %c0_77] : memref<9x4x4xf32, #tpu.memory_space<vmem>>, vector<1x4x4xf32>
    %108 = vector.shape_cast %107 : vector<1x4x4xf32> to vector<4x4xf32>
    %cst_78 = arith.constant dense<0.000000e+00> : vector<4x512xf32>
    %109 = tpu.matmul %108, %106, %cst_78 {dimension_numbers = #tpu.dot_dimension_numbers<[1], [0], [0], [1], [0, 0, 1, 1], [], []>} : vector<4x4xf32>, vector<4x512xf32>, vector<4x512xf32> -> vector<4x512xf32>
    %110 = arith.addf %101, %109 : vector<4x512xf32>
    %c15_i32_79 = arith.constant 15 : i32
    %111 = tpu.dynamic_rotate %86 by %c15_i32_79 dim 1 : vector<4x512xf32>, i32 -> vector<4x512xf32>
    %c2_80 = arith.constant 2 : index
    %c0_81 = arith.constant 0 : index
    %c0_82 = arith.constant 0 : index
    %112 = vector.load %arg0[%c2_80, %c0_81, %c0_82] : memref<8x1x512xf32, #tpu.memory_space<vmem>>, vector<1x1x512xf32>
    %113 = vector.shape_cast %112 : vector<1x1x512xf32> to vector<1x512xf32>
    %114 = vector.broadcast %113 : vector<1x512xf32> to vector<4x512xf32>
    %115 = arith.mulf %111, %114 : vector<4x512xf32>
    %c2_83 = arith.constant 2 : index
    %c0_84 = arith.constant 0 : index
    %c0_85 = arith.constant 0 : index
    %116 = vector.load %arg4[%c2_83, %c0_84, %c0_85] : memref<9x4x4xf32, #tpu.memory_space<vmem>>, vector<1x4x4xf32>
    %117 = vector.shape_cast %116 : vector<1x4x4xf32> to vector<4x4xf32>
    %cst_86 = arith.constant dense<0.000000e+00> : vector<4x512xf32>
    %118 = tpu.matmul %117, %115, %cst_86 {dimension_numbers = #tpu.dot_dimension_numbers<[1], [0], [0], [1], [0, 0, 1, 1], [], []>} : vector<4x4xf32>, vector<4x512xf32>, vector<4x512xf32> -> vector<4x512xf32>
    %119 = arith.addf %110, %118 : vector<4x512xf32>
    %c1_i32_87 = arith.constant 1 : i32
    %120 = tpu.dynamic_rotate %86 by %c1_i32_87 dim 1 : vector<4x512xf32>, i32 -> vector<4x512xf32>
    %c3_88 = arith.constant 3 : index
    %c0_89 = arith.constant 0 : index
    %c0_90 = arith.constant 0 : index
    %121 = vector.load %arg0[%c3_88, %c0_89, %c0_90] : memref<8x1x512xf32, #tpu.memory_space<vmem>>, vector<1x1x512xf32>
    %122 = vector.shape_cast %121 : vector<1x1x512xf32> to vector<1x512xf32>
    %123 = vector.broadcast %122 : vector<1x512xf32> to vector<4x512xf32>
    %124 = arith.mulf %120, %123 : vector<4x512xf32>
    %c3_91 = arith.constant 3 : index
    %c0_92 = arith.constant 0 : index
    %c0_93 = arith.constant 0 : index
    %125 = vector.load %arg4[%c3_91, %c0_92, %c0_93] : memref<9x4x4xf32, #tpu.memory_space<vmem>>, vector<1x4x4xf32>
    %126 = vector.shape_cast %125 : vector<1x4x4xf32> to vector<4x4xf32>
    %cst_94 = arith.constant dense<0.000000e+00> : vector<4x512xf32>
    %127 = tpu.matmul %126, %124, %cst_94 {dimension_numbers = #tpu.dot_dimension_numbers<[1], [0], [0], [1], [0, 0, 1, 1], [], []>} : vector<4x4xf32>, vector<4x512xf32>, vector<4x512xf32> -> vector<4x512xf32>
    %128 = arith.addf %119, %127 : vector<4x512xf32>
    %c511_i32_95 = arith.constant 511 : i32
    %129 = tpu.dynamic_rotate %86 by %c511_i32_95 dim 1 : vector<4x512xf32>, i32 -> vector<4x512xf32>
    %c4_96 = arith.constant 4 : index
    %c0_97 = arith.constant 0 : index
    %c0_98 = arith.constant 0 : index
    %130 = vector.load %arg0[%c4_96, %c0_97, %c0_98] : memref<8x1x512xf32, #tpu.memory_space<vmem>>, vector<1x1x512xf32>
    %131 = vector.shape_cast %130 : vector<1x1x512xf32> to vector<1x512xf32>
    %132 = vector.broadcast %131 : vector<1x512xf32> to vector<4x512xf32>
    %133 = arith.mulf %129, %132 : vector<4x512xf32>
    %c5_99 = arith.constant 5 : index
    %c0_100 = arith.constant 0 : index
    %c0_101 = arith.constant 0 : index
    %134 = vector.load %arg4[%c5_99, %c0_100, %c0_101] : memref<9x4x4xf32, #tpu.memory_space<vmem>>, vector<1x4x4xf32>
    %135 = vector.shape_cast %134 : vector<1x4x4xf32> to vector<4x4xf32>
    %cst_102 = arith.constant dense<0.000000e+00> : vector<4x512xf32>
    %136 = tpu.matmul %135, %133, %cst_102 {dimension_numbers = #tpu.dot_dimension_numbers<[1], [0], [0], [1], [0, 0, 1, 1], [], []>} : vector<4x4xf32>, vector<4x512xf32>, vector<4x512xf32> -> vector<4x512xf32>
    %137 = arith.addf %128, %136 : vector<4x512xf32>
    %c497_i32_103 = arith.constant 497 : i32
    %138 = tpu.dynamic_rotate %86 by %c497_i32_103 dim 1 : vector<4x512xf32>, i32 -> vector<4x512xf32>
    %c5_104 = arith.constant 5 : index
    %c0_105 = arith.constant 0 : index
    %c0_106 = arith.constant 0 : index
    %139 = vector.load %arg0[%c5_104, %c0_105, %c0_106] : memref<8x1x512xf32, #tpu.memory_space<vmem>>, vector<1x1x512xf32>
    %140 = vector.shape_cast %139 : vector<1x1x512xf32> to vector<1x512xf32>
    %141 = vector.broadcast %140 : vector<1x512xf32> to vector<4x512xf32>
    %142 = arith.mulf %138, %141 : vector<4x512xf32>
    %c6_107 = arith.constant 6 : index
    %c0_108 = arith.constant 0 : index
    %c0_109 = arith.constant 0 : index
    %143 = vector.load %arg4[%c6_107, %c0_108, %c0_109] : memref<9x4x4xf32, #tpu.memory_space<vmem>>, vector<1x4x4xf32>
    %144 = vector.shape_cast %143 : vector<1x4x4xf32> to vector<4x4xf32>
    %cst_110 = arith.constant dense<0.000000e+00> : vector<4x512xf32>
    %145 = tpu.matmul %144, %142, %cst_110 {dimension_numbers = #tpu.dot_dimension_numbers<[1], [0], [0], [1], [0, 0, 1, 1], [], []>} : vector<4x4xf32>, vector<4x512xf32>, vector<4x512xf32> -> vector<4x512xf32>
    %146 = arith.addf %137, %145 : vector<4x512xf32>
    %c496_i32_111 = arith.constant 496 : i32
    %147 = tpu.dynamic_rotate %86 by %c496_i32_111 dim 1 : vector<4x512xf32>, i32 -> vector<4x512xf32>
    %c6_112 = arith.constant 6 : index
    %c0_113 = arith.constant 0 : index
    %c0_114 = arith.constant 0 : index
    %148 = vector.load %arg0[%c6_112, %c0_113, %c0_114] : memref<8x1x512xf32, #tpu.memory_space<vmem>>, vector<1x1x512xf32>
    %149 = vector.shape_cast %148 : vector<1x1x512xf32> to vector<1x512xf32>
    %150 = vector.broadcast %149 : vector<1x512xf32> to vector<4x512xf32>
    %151 = arith.mulf %147, %150 : vector<4x512xf32>
    %c7_115 = arith.constant 7 : index
    %c0_116 = arith.constant 0 : index
    %c0_117 = arith.constant 0 : index
    %152 = vector.load %arg4[%c7_115, %c0_116, %c0_117] : memref<9x4x4xf32, #tpu.memory_space<vmem>>, vector<1x4x4xf32>
    %153 = vector.shape_cast %152 : vector<1x4x4xf32> to vector<4x4xf32>
    %cst_118 = arith.constant dense<0.000000e+00> : vector<4x512xf32>
    %154 = tpu.matmul %153, %151, %cst_118 {dimension_numbers = #tpu.dot_dimension_numbers<[1], [0], [0], [1], [0, 0, 1, 1], [], []>} : vector<4x4xf32>, vector<4x512xf32>, vector<4x512xf32> -> vector<4x512xf32>
    %155 = arith.addf %146, %154 : vector<4x512xf32>
    %c495_i32_119 = arith.constant 495 : i32
    %156 = tpu.dynamic_rotate %86 by %c495_i32_119 dim 1 : vector<4x512xf32>, i32 -> vector<4x512xf32>
    %c7_120 = arith.constant 7 : index
    %c0_121 = arith.constant 0 : index
    %c0_122 = arith.constant 0 : index
    %157 = vector.load %arg0[%c7_120, %c0_121, %c0_122] : memref<8x1x512xf32, #tpu.memory_space<vmem>>, vector<1x1x512xf32>
    %158 = vector.shape_cast %157 : vector<1x1x512xf32> to vector<1x512xf32>
    %159 = vector.broadcast %158 : vector<1x512xf32> to vector<4x512xf32>
    %160 = arith.mulf %156, %159 : vector<4x512xf32>
    %c8_123 = arith.constant 8 : index
    %c0_124 = arith.constant 0 : index
    %c0_125 = arith.constant 0 : index
    %161 = vector.load %arg4[%c8_123, %c0_124, %c0_125] : memref<9x4x4xf32, #tpu.memory_space<vmem>>, vector<1x4x4xf32>
    %162 = vector.shape_cast %161 : vector<1x4x4xf32> to vector<4x4xf32>
    %cst_126 = arith.constant dense<0.000000e+00> : vector<4x512xf32>
    %163 = tpu.matmul %162, %160, %cst_126 {dimension_numbers = #tpu.dot_dimension_numbers<[1], [0], [0], [1], [0, 0, 1, 1], [], []>} : vector<4x4xf32>, vector<4x512xf32>, vector<4x512xf32> -> vector<4x512xf32>
    %164 = arith.addf %155, %163 : vector<4x512xf32>
    %165 = arith.addf %164, %0 : vector<4x512xf32>
    %c0_127 = arith.constant 0 : index
    %c0_128 = arith.constant 0 : index
    %166 = vector.load %arg6[%c0_127, %c0_128] : memref<4x512xf32, #tpu.memory_space<vmem>>, vector<4x512xf32>
    tpu.vector_store %arg6[%c0_127, %c0_128], %165 {strides = array<i32>} : memref<4x512xf32, #tpu.memory_space<vmem>>, vector<4x512xf32>,
    return
  }
}

</mosaic_0001>

<bundles_post_ra>
// kernel: resblock_forward.1
= control target key start
LH: loop header
LB: loop body
LE: loop exit
PB: predicated region body
PF: predicated region fallthrough
CT: control target
= control target key end

     0   :  { %vm41_vm0 = vcmask 1043456   ;;  %v4298_v2 = vmov 0.0   ;;  %s3607_s25 = smov 17   ;;  %vm37_vm1 = vcmask 31744   ;;  %s3608_s28 = smov 16   ;;  %v3614_v6 = vmov 0   ;;  %s4291_s1 = inlined_call_operand.vmem [shape: f32[4,512], index: 1, kind: input, shape index: {}]   ;;  %s4292_s2 = inlined_call_operand.vmem [shape: f32[9,4,4], index: 2, kind: input, shape index: {}]   ;;  %s4293_s3 = inlined_call_operand.vmem [shape: f32[4,1], index: 3, kind: input, shape index: {}]   ;;  %s4294_s0 = inlined_call_operand.vmem [shape: f32[8,1,512], index: 0, kind: input, shape index: {}]   ;;  %s4295_s4 = inlined_call_operand.vmem [shape: f32[9,4,4], index: 4, kind: input, shape index: {}]   ;;  %s4296_s5 = inlined_call_operand.vmem [shape: f32[4,1], index: 5, kind: input, shape index: {}]   ;;  %s4297_s6 = inlined_call_operand.vmem [shape: f32[4,512], index: 6, kind: output, shape index: {}]  }
   0x1   :  { %v24_v0 = vld [vmem:[%s4291_s1 + $0x8] sm:$0xff]  ;;  %v23_v1 = vld [vmem:[%s4291_s1] sm:$0xff]  ;;  %114 = vmatprep.mubr.f32.mxu0 %v4298_v2  ;;  %185 = vmatprep.mubr.f32.mxu1 %v4298_v2  ;;  %v3452_v5 = vld [vmem:[%s4292_s2 + $0x10] sm:$0xf]  ;;  %s3609_s29 = smov 15   ;;  %s3610_s30 = smov 1   ;;  %v202_v8 = vlaneseq }
   0x2   :  { %198 = vrot.lane.b32.xlu1 %v24_v0, %s3607_s25  ;;  %194 = vrot.lane.b32.xlu0 %v23_v1, %s3607_s25  ;;  %v3661_v3 = vcombine.high %v24_v0, %v24_v0  ;;  %v3663_v4 = vcombine.high %v23_v1, %v23_v1  ;;  %s3611_s7 = smov 127   ;;  %s3612_s8 = smov 113   ;;  %v27_v7 = vld [vmem:[%s4293_s3] sm:$0xf]  ;;  %v3465_v18 = vld [vmem:[%s4294_s0 + $0x4] sm:$0xf] }
   0x3   :  { %s3613_s9 = smov 112   ;;  %3593 = vset.pattern.permute.xlu0 %v3614_v6  ;;  %s3615_s10 = smov 111   ;;  %v212_v9 = vshrl.u32 %v202_v8, 7  ;;  %v3727_v10 = vand.u32 127, %v202_v8  ;;  %v209_v15 = vld [vmem:[%s4294_s0] sm:$0xf] }
   0x4   :  { %4311 = vst [vmem:[#allocation2_spill] sm:$0xff] %v3661_v3  ;;  %4312 = vst [vmem:[#allocation3_spill] sm:$0xff] %v3663_v4  ;;  %3453 = vmatprep.subr.msk.mxu0 %vm41_vm0, %v3663_v4  ;;  %3456 = vmatprep.subr.msk.mxu1 %vm41_vm0, %v3661_v3  ;;  %v235_v34 = vld [vmem:[%s4292_s2] sm:$0xf]  ;;  %v3473_v42 = vld [vmem:[%s4294_s0 + $0x8] sm:$0xf] }
   0x5   :  { %3454 = vmatpush1.msk.msra.mxu0 %vm41_vm0, %v23_v1  ;;  %3457 = vmatpush1.msk.msra.mxu1 %vm41_vm0, %v24_v0  ;;  %v3729_v11 = vsub.s32 0, %v212_v9  ;;  %v3731_v12 = vsub.s32 3, %v212_v9  ;;  %v3733_v13 = vsub.s32 1, %v212_v9  ;;  %v3735_v14 = vsub.s32 2, %v212_v9  ;;  %v3466_v52 = vld [vmem:[%s4292_s2 + $0x4] sm:$0xf] }
   0x6   :  { %200 = vrot.lane.b32.xlu1 %v3661_v3, %s3607_s25  ;;  %196 = vrot.lane.b32.xlu0 %v3663_v4, %s3607_s25  ;;  %vm204_vm2 = vcmp.lt.s32.totalorder %v3727_v10, 17  ;;  %vm405_vm3 = vcmp.lt.s32.totalorder %v3727_v10, 16  ;;  %vm608_vm4 = vcmp.lt.s32.totalorder %v3727_v10, 15  ;;  %v3481_v60 = vld [vmem:[%s4294_s0 + $0xc] sm:$0xf]  ;;  %vm811_vm5 = vcmp.lt.s32.totalorder %v3727_v10, 1 }
   0x7   :  { %3455 = vmatmul.mubr.msk.f32.vlgmr.msra.gmra.mxu0 %vm37_vm1, %v3452_v5  ;;  %3458 = vmatmul.mubr.msk.f32.vlgmr.msra.gmra.mxu1 %vm37_vm1, %v3452_v5  ;;  %v3745_v19 = vrot.slane %v209_v15, %v3729_v11  ;;  %v3748_v20 = vrot.slane %v209_v15, %v3731_v12  ;;  %v3751_v21 = vrot.slane %v209_v15, %v3733_v13  ;;  %v3474_v9 = vld [vmem:[%s4292_s2 + $0x8] sm:$0xf]  ;;  %vm1014_vm6 = vcmp.lt.s32.totalorder %v3727_v10, 127 }
   0x8   :  { %315 = vmatprep.mubr.f32.mxu0 %v4298_v2  ;;  %386 = vmatprep.mubr.f32.mxu1 %v4298_v2  ;;  %v3754_v22 = vrot.slane %v209_v15, %v3735_v14  ;;  %v3758_v25 = vrot.slane %v3465_v18, %v3733_v13  ;;  %v3782_v38 = vrot.slane %v3465_v18, %v3729_v11  ;;  %vm1217_vm7 = vcmp.lt.s32.totalorder %v3727_v10, 113 }
   0x9   :  { %v3786_v40 = vrot.slane %v3465_v18, %v3735_v14  ;;  %v3789_v41 = vrot.slane %v3465_v18, %v3731_v12  ;;  %v3810_v51 = vrot.slane %v3473_v42, %v3733_v13  ;;  %v3821_v56 = vrot.slane %v3473_v42, %v3729_v11 }
   0xa   :  { %399 = vrot.lane.b32.xlu1 %v3663_v4, %s3608_s28  ;;  %397 = vrot.lane.b32.xlu0 %v23_v1, %s3608_s28  ;;  %v3826_v58 = vrot.slane %v3473_v42, %v3735_v14  ;;  %v3829_v59 = vrot.slane %v3473_v42, %v3731_v12  ;;  %v3849_v8 = vrot.slane %v3481_v60, %v3733_v13  ;;  %vm1420_vm8 = vcmp.lt.s32.totalorder %v3727_v10, 112 }
   0xb   :  { %v3860_v18 = vrot.slane %v3481_v60, %v3729_v11  ;;  %vm1623_vm9 = vcmp.lt.s32.totalorder %v3727_v10, 111 }
   0xe   :  { %403 = vrot.lane.b32.xlu1 %v3661_v3, %s3608_s28  ;;  %401 = vrot.lane.b32.xlu0 %v24_v0, %s3608_s28 }
  0x12   :  { %602 = vrot.lane.b32.xlu1 %v3663_v4, %s3609_s29  ;;  %600 = vrot.lane.b32.xlu0 %v23_v1, %s3609_s29 }
  0x16   :  { %606 = vrot.lane.b32.xlu1 %v3661_v3, %s3609_s29  ;;  %604 = vrot.lane.b32.xlu0 %v24_v0, %s3609_s29 }
  0x1a   :  { %805 = vrot.lane.b32.xlu1 %v3663_v4, %s3610_s30  ;;  %803 = vrot.lane.b32.xlu0 %v23_v1, %s3610_s30 }
  0x1e   :  { %809 = vrot.lane.b32.xlu1 %v3661_v3, %s3610_s30  ;;  %807 = vrot.lane.b32.xlu0 %v24_v0, %s3610_s30 }
  0x22   :  { %1008 = vrot.lane.b32.xlu1 %v3663_v4, %s3611_s7  ;;  %1006 = vrot.lane.b32.xlu0 %v23_v1, %s3611_s7 }
  0x26   :  { %1012 = vrot.lane.b32.xlu1 %v3661_v3, %s3611_s7  ;;  %1010 = vrot.lane.b32.xlu0 %v24_v0, %s3611_s7 }
  0x2a   :  { %1211 = vrot.lane.b32.xlu1 %v3663_v4, %s3612_s8  ;;  %1209 = vrot.lane.b32.xlu0 %v23_v1, %s3612_s8 }
  0x2e   :  { %1215 = vrot.lane.b32.xlu1 %v3661_v3, %s3612_s8  ;;  %1213 = vrot.lane.b32.xlu0 %v24_v0, %s3612_s8 }
  0x32   :  { %1414 = vrot.lane.b32.xlu1 %v3663_v4, %s3613_s9  ;;  %1412 = vrot.lane.b32.xlu0 %v23_v1, %s3613_s9 }
  0x36   :  { %1418 = vrot.lane.b32.xlu1 %v3661_v3, %s3613_s9  ;;  %1416 = vrot.lane.b32.xlu0 %v24_v0, %s3613_s9 }
  0x3a   :  { %1617 = vrot.lane.b32.xlu1 %v3663_v4, %s3615_s10  ;;  %1615 = vrot.lane.b32.xlu0 %v23_v1, %s3615_s10 }
  0x3e   :  { %1621 = vrot.lane.b32.xlu1 %v3661_v3, %s3615_s10  ;;  %1619 = vrot.lane.b32.xlu0 %v24_v0, %s3615_s10 }
  0x42   :  { %30 = vperm.xlu0 %3593, %v27_v7  }
  0x74   :  { %v199_v16 = vpop.permute.xlu1 %198  ;;  %v195_v17 = vpop.permute.xlu0 %194 }
  0x78   :  { %v201_v23 = vpop.permute.xlu1 %200  ;;  %v197_v24 = vpop.permute.xlu0 %196 }
  0x79   :  { %v205_v26 = vsel %vm204_vm2, %v199_v16, %v201_v23  ;;  %v208_v27 = vsel %vm204_vm2, %v201_v23, %v195_v17  ;;  %v206_v28 = vsel %vm204_vm2, %v197_v24, %v199_v16  ;;  %v207_v29 = vsel %vm204_vm2, %v195_v17, %v197_v24 }
  0x7a   :  { %v231_v30 = vmul.f32 %v3745_v19, %v208_v27  ;;  %v234_v31 = vmul.f32 %v3748_v20, %v205_v26  ;;  %v232_v32 = vmul.f32 %v3751_v21, %v207_v29  ;;  %v233_v33 = vmul.f32 %v3754_v22, %v206_v28 }
  0x7b   :  { %v3865_v24 = vrot.slane %v3481_v60, %v3735_v14  ;;  %v3868_v26 = vrot.slane %v3481_v60, %v3731_v12  ;;  %v3490_v60 = vld [vmem:[%s4292_s2 + $0x14] sm:$0xf] }
  0x7c   :  { %v400_v35 = vpop.permute.xlu1 %399  ;;  %v398_v36 = vpop.permute.xlu0 %397  ;;  %3459 = vmatprep.subr.msk.mxu0 %vm41_vm0, %v232_v32  ;;  %3462 = vmatprep.subr.msk.mxu1 %vm41_vm0, %v234_v31 }
  0x7d   :  { %v408_v37 = vsel %vm405_vm3, %v398_v36, %v400_v35  ;;  %3460 = vmatpush1.msk.msra.mxu0 %vm41_vm0, %v231_v30  ;;  %3463 = vmatpush1.msk.msra.mxu1 %vm41_vm0, %v233_v33 }
  0x7e   :  { %v434_v39 = vmul.f32 %v3758_v25, %v408_v37  ;;  %3461 = vmatmul.mubr.msk.f32.vlgmr.msra.gmra.mxu0 %vm37_vm1, %v235_v34  ;;  %3464 = vmatmul.mubr.msk.f32.vlgmr.msra.gmra.mxu1 %vm37_vm1, %v235_v34 }
  0x7f   :  { %518 = vmatprep.mubr.f32.mxu0 %v4298_v2  ;;  %589 = vmatprep.mubr.f32.mxu1 %v4298_v2 }
  0x80   :  { %v404_v43 = vpop.permute.xlu1 %403  ;;  %v402_v44 = vpop.permute.xlu0 %401  ;;  %3467 = vmatprep.subr.msk.mxu0 %vm41_vm0, %v434_v39  ;;  %v3489_v39 = vld [vmem:[%s4294_s0 + $0x10] sm:$0xf] }
  0x81   :  { %v409_v45 = vsel %vm405_vm3, %v404_v43, %v398_v36  ;;  %v406_v46 = vsel %vm405_vm3, %v402_v44, %v404_v43  ;;  %v407_v47 = vsel %vm405_vm3, %v400_v35, %v402_v44  ;;  %v3482_v35 = vld [vmem:[%s4292_s2 + $0xc] sm:$0xf]  ;;  %v3895_v42 = vrot.slane %v3489_v39, %v3731_v12 }
  0x82   :  { %v433_v48 = vmul.f32 %v3782_v38, %v409_v45  ;;  %v435_v49 = vmul.f32 %v3786_v40, %v407_v47  ;;  %v436_v50 = vmul.f32 %v3789_v41, %v406_v46  ;;  %v3898_v43 = vrot.slane %v3489_v39, %v3733_v13 }
  0x83   :  { %v3901_v44 = vrot.slane %v3489_v39, %v3735_v14  ;;  %v3906_v45 = vrot.slane %v3489_v39, %v3729_v11 }
  0x84   :  { %v603_v53 = vpop.permute.xlu1 %602  ;;  %v601_v54 = vpop.permute.xlu0 %600  ;;  %3468 = vmatpush1.msk.msra.mxu0 %vm41_vm0, %v433_v48  ;;  %3470 = vmatprep.subr.msk.mxu1 %vm41_vm0, %v436_v50 }
  0x85   :  { %v611_v55 = vsel %vm608_vm4, %v601_v54, %v603_v53  ;;  %3471 = vmatpush1.msk.msra.mxu1 %vm41_vm0, %v435_v49  ;;  %3469 = vmatmul.mubr.msk.f32.vlgmr.msra.gmra.mxu0 %vm37_vm1, %v3466_v52 }
  0x86   :  { %v637_v57 = vmul.f32 %v3810_v51, %v611_v55  ;;  %3472 = vmatmul.mubr.msk.f32.vlgmr.msra.gmra.mxu1 %vm37_vm1, %v3466_v52  ;;  %721 = vmatprep.mubr.f32.mxu0 %v4298_v2 }
  0x87   :  { %792 = vmatprep.mubr.f32.mxu1 %v4298_v2 }
  0x88   :  { %v607_v61 = vpop.permute.xlu1 %606  ;;  %v605_v62 = vpop.permute.xlu0 %604  ;;  %3475 = vmatprep.subr.msk.mxu0 %vm41_vm0, %v637_v57 }
  0x89   :  { %v612_v63 = vsel %vm608_vm4, %v607_v61, %v601_v54  ;;  %v609_v0 = vsel %vm608_vm4, %v605_v62, %v607_v61  ;;  %v610_v1 = vsel %vm608_vm4, %v603_v53, %v605_v62 }
  0x8a   :  { %v636_v5 = vmul.f32 %v3821_v56, %v612_v63  ;;  %v638_v6 = vmul.f32 %v3826_v58, %v610_v1  ;;  %v639_v7 = vmul.f32 %v3829_v59, %v609_v0  ;;  %v3497_v63 = vld [vmem:[%s4294_s0 + $0x14] sm:$0xf] }
  0x8b   :  { %v3934_v0 = vrot.slane %v3497_v63, %v3731_v12  ;;  %v3937_v1 = vrot.slane %v3497_v63, %v3733_v13 }
  0x8c   :  { %v806_v15 = vpop.permute.xlu1 %805  ;;  %v804_v16 = vpop.permute.xlu0 %803  ;;  %3476 = vmatpush1.msk.msra.mxu0 %vm41_vm0, %v636_v5  ;;  %3478 = vmatprep.subr.msk.mxu1 %vm41_vm0, %v639_v7  ;;  %v3940_v5 = vrot.slane %v3497_v63, %v3735_v14 }
  0x8d   :  { %v814_v17 = vsel %vm811_vm5, %v804_v16, %v806_v15  ;;  %3479 = vmatpush1.msk.msra.mxu1 %vm41_vm0, %v638_v6  ;;  %3477 = vmatmul.mubr.msk.f32.vlgmr.msra.gmra.mxu0 %vm37_vm1, %v3474_v9  ;;  %4313 = vst [vmem:[#allocation4_spill] sm:$0xff] %v3934_v0  ;;  %v3944_v6 = vrot.slane %v3497_v63, %v3729_v11  ;;  %v3513_v63 = vld [vmem:[%s4294_s0 + $0x1c] sm:$0xf] }
  0x8e   :  { %v840_v23 = vmul.f32 %v3849_v8, %v814_v17  ;;  %3480 = vmatmul.mubr.msk.f32.vlgmr.msra.gmra.mxu1 %vm37_vm1, %v3474_v9  ;;  %924 = vmatprep.mubr.f32.mxu0 %v4298_v2 }
  0x8f   :  { %995 = vmatprep.mubr.f32.mxu1 %v4298_v2 }
  0x90   :  { %v810_v27 = vpop.permute.xlu1 %809  ;;  %v808_v28 = vpop.permute.xlu0 %807  ;;  %3483 = vmatprep.subr.msk.mxu0 %vm41_vm0, %v840_v23 }
  0x91   :  { %v815_v29 = vsel %vm811_vm5, %v810_v27, %v804_v16  ;;  %v812_v30 = vsel %vm811_vm5, %v808_v28, %v810_v27  ;;  %v813_v31 = vsel %vm811_vm5, %v806_v15, %v808_v28 }
  0x92   :  { %v839_v32 = vmul.f32 %v3860_v18, %v815_v29  ;;  %v841_v33 = vmul.f32 %v3865_v24, %v813_v31  ;;  %v842_v34 = vmul.f32 %v3868_v26, %v812_v30  ;;  %v3498_v31 = vld [vmem:[%s4292_s2 + $0x18] sm:$0xf] }
  0x94   :  { %v1009_v36 = vpop.permute.xlu1 %1008  ;;  %v1007_v37 = vpop.permute.xlu0 %1006  ;;  %3484 = vmatpush1.msk.msra.mxu0 %vm41_vm0, %v839_v32  ;;  %3486 = vmatprep.subr.msk.mxu1 %vm41_vm0, %v842_v34  ;;  %v3505_v34 = vld [vmem:[%s4294_s0 + $0x18] sm:$0xf] }
  0x95   :  { %3487 = vmatpush1.msk.msra.mxu1 %vm41_vm0, %v841_v33  ;;  %3485 = vmatmul.mubr.msk.f32.vlgmr.msra.gmra.mxu0 %vm37_vm1, %v3482_v35  ;;  %v1017_v46 = vsel %vm1014_vm6, %v1007_v37, %v1009_v36  ;;  %v3983_v39 = vrot.slane %v3505_v34, %v3729_v11 }
  0x96   :  { %3488 = vmatmul.mubr.msk.f32.vlgmr.msra.gmra.mxu1 %vm37_vm1, %v3482_v35  ;;  %1127 = vmatprep.mubr.f32.mxu0 %v4298_v2  ;;  %v1042_v57 = vmul.f32 %v3906_v45, %v1017_v46  ;;  %v3974_v35 = vrot.slane %v3505_v34, %v3731_v12 }
  0x97   :  { %1198 = vmatprep.mubr.f32.mxu1 %v4298_v2  ;;  %4317 = vst [vmem:[#allocation8_spill] sm:$0xff] %v3983_v39 }
  0x98   :  { %v1013_v47 = vpop.permute.xlu1 %1012  ;;  %v1011_v48 = vpop.permute.xlu0 %1010  ;;  %4314 = vst [vmem:[#allocation5_spill] sm:$0xff] %v3974_v35 }
  0x99   :  { %v1018_v49 = vsel %vm1014_vm6, %v1013_v47, %v1007_v37  ;;  %v1015_v50 = vsel %vm1014_vm6, %v1011_v48, %v1013_v47  ;;  %v1016_v52 = vsel %vm1014_vm6, %v1009_v36, %v1011_v48  ;;  %v3977_v36 = vrot.slane %v3505_v34, %v3733_v13 }
  0x9a   :  { %v1045_v53 = vmul.f32 %v3895_v42, %v1018_v49  ;;  %v1043_v54 = vmul.f32 %v3898_v43, %v1016_v52  ;;  %v1044_v55 = vmul.f32 %v3901_v44, %v1015_v50  ;;  %v3980_v37 = vrot.slane %v3505_v34, %v3735_v14 }
  0x9b   :  { %4315 = vst [vmem:[#allocation6_spill] sm:$0xff] %v3977_v36 }
  0x9c   :  { %v1212_v61 = vpop.permute.xlu1 %1211  ;;  %v1210_v62 = vpop.permute.xlu0 %1209  ;;  %3491 = vmatprep.subr.msk.mxu0 %vm41_vm0, %v1043_v54  ;;  %3494 = vmatprep.subr.msk.mxu1 %vm41_vm0, %v1045_v53  ;;  %4316 = vst [vmem:[#allocation7_spill] sm:$0xff] %v3980_v37 }
  0x9d   :  { %3492 = vmatpush1.msk.msra.mxu0 %vm41_vm0, %v1042_v57  ;;  %3495 = vmatpush1.msk.msra.mxu1 %vm41_vm0, %v1044_v55  ;;  %v1220_v7 = vsel %vm1217_vm7, %v1210_v62, %v1212_v61 }
  0x9e   :  { %3493 = vmatmul.mubr.msk.f32.vlgmr.msra.gmra.mxu0 %vm37_vm1, %v3490_v60  ;;  %3496 = vmatmul.mubr.msk.f32.vlgmr.msra.gmra.mxu1 %vm37_vm1, %v3490_v60  ;;  %v1245_v30 = vmul.f32 %v3944_v6, %v1220_v7  ;;  %v3506_v60 = vld [vmem:[%s4292_s2 + $0x1c] sm:$0xf]  ;;  %v4013_v7 = vrot.slane %v3513_v63, %v3731_v12 }
  0x9f   :  { %1330 = vmatprep.mubr.f32.mxu0 %v4298_v2  ;;  %1401 = vmatprep.mubr.f32.mxu1 %v4298_v2 }
  0xa0   :  { %v1216_v9 = vpop.permute.xlu1 %1215  ;;  %v1214_v15 = vpop.permute.xlu0 %1213  ;;  %4318 = vst [vmem:[#allocation9_spill] sm:$0xff] %v4013_v7 }
  0xa1   :  { %v1221_v16 = vsel %vm1217_vm7, %v1216_v9, %v1210_v62  ;;  %v1218_v17 = vsel %vm1217_vm7, %v1214_v15, %v1216_v9  ;;  %v1219_v23 = vsel %vm1217_vm7, %v1212_v61, %v1214_v15  ;;  %v4016_v9 = vrot.slane %v3513_v63, %v3733_v13 }
  0xa2   :  { %v1248_v27 = vmul.f32 %v3934_v0, %v1221_v16  ;;  %v1246_v28 = vmul.f32 %v3937_v1, %v1219_v23  ;;  %v1247_v29 = vmul.f32 %v3940_v5, %v1218_v17  ;;  %v4019_v15 = vrot.slane %v3513_v63, %v3735_v14 }
  0xa3   :  { %4319 = vst [vmem:[#allocation10_spill] sm:$0xff] %v4016_v9  ;;  %v4022_v16 = vrot.slane %v3513_v63, %v3729_v11 }
  0xa4   :  { %v1415_v32 = vpop.permute.xlu1 %1414  ;;  %v1413_v33 = vpop.permute.xlu0 %1412  ;;  %3499 = vmatprep.subr.msk.mxu0 %vm41_vm0, %v1246_v28  ;;  %3502 = vmatprep.subr.msk.mxu1 %vm41_vm0, %v1248_v27  ;;  %4320 = vst [vmem:[#allocation11_spill] sm:$0xff] %v4019_v15 }
  0xa5   :  { %3500 = vmatpush1.msk.msra.mxu0 %vm41_vm0, %v1245_v30  ;;  %3503 = vmatpush1.msk.msra.mxu1 %vm41_vm0, %v1247_v29  ;;  %v1423_v46 = vsel %vm1420_vm8, %v1413_v33, %v1415_v32  ;;  %4321 = vst [vmem:[#allocation12_spill] sm:$0xff] %v4022_v16 }
  0xa6   :  { %3501 = vmatmul.mubr.msk.f32.vlgmr.msra.gmra.mxu0 %vm37_vm1, %v3498_v31  ;;  %3504 = vmatmul.mubr.msk.f32.vlgmr.msra.gmra.mxu1 %vm37_vm1, %v3498_v31  ;;  %v1448_v57 = vmul.f32 %v3983_v39, %v1423_v46  ;;  %v3514_v31 = vld [vmem:[%s4292_s2 + $0x20] sm:$0xf] }
  0xa7   :  { %1533 = vmatprep.mubr.f32.mxu0 %v4298_v2  ;;  %1604 = vmatprep.mubr.f32.mxu1 %v4298_v2 }
  0xa8   :  { %v1419_v47 = vpop.permute.xlu1 %1418  ;;  %v1417_v48 = vpop.permute.xlu0 %1416 }
  0xa9   :  { %v1424_v49 = vsel %vm1420_vm8, %v1419_v47, %v1413_v33  ;;  %v1421_v50 = vsel %vm1420_vm8, %v1417_v48, %v1419_v47  ;;  %v1422_v52 = vsel %vm1420_vm8, %v1415_v32, %v1417_v48 }
  0xaa   :  { %v1451_v53 = vmul.f32 %v3974_v35, %v1424_v49  ;;  %v1449_v54 = vmul.f32 %v3977_v36, %v1422_v52  ;;  %v1450_v55 = vmul.f32 %v3980_v37, %v1421_v50 }
  0xac   :  { %v1618_v61 = vpop.permute.xlu1 %1617  ;;  %v1616_v62 = vpop.permute.xlu0 %1615  ;;  %3507 = vmatprep.subr.msk.mxu0 %vm41_vm0, %v1449_v54  ;;  %3510 = vmatprep.subr.msk.mxu1 %vm41_vm0, %v1451_v53 }
  0xad   :  { %3508 = vmatpush1.msk.msra.mxu0 %vm41_vm0, %v1448_v57  ;;  %3511 = vmatpush1.msk.msra.mxu1 %vm41_vm0, %v1450_v55  ;;  %v1626_v17 = vsel %vm1623_vm9, %v1616_v62, %v1618_v61 }
  0xae   :  { %3509 = vmatmul.mubr.msk.f32.vlgmr.msra.gmra.mxu0 %vm37_vm1, %v3506_v60  ;;  %3512 = vmatmul.mubr.msk.f32.vlgmr.msra.gmra.mxu1 %vm37_vm1, %v3506_v60  ;;  %v1651_v30 = vmul.f32 %v4022_v16, %v1626_v17 }
  0xaf   :  { %1736 = vmatprep.mubr.f32.mxu0 %v4298_v2  ;;  %1807 = vmatprep.mubr.f32.mxu1 %v4298_v2 }
  0xb0   :  { %v1622_v23 = vpop.permute.xlu1 %1621  ;;  %v1620_v27 = vpop.permute.xlu0 %1619 }
  0xb1   :  { %v1627_v12 = vsel %vm1623_vm9, %v1622_v23, %v1616_v62  ;;  %v1624_v13 = vsel %vm1623_vm9, %v1620_v27, %v1622_v23  ;;  %v1625_v14 = vsel %vm1623_vm9, %v1618_v61, %v1620_v27 }
  0xb2   :  { %v1654_v11 = vmul.f32 %v4013_v7, %v1627_v12  ;;  %v1652_v28 = vmul.f32 %v4016_v9, %v1625_v14  ;;  %v1653_v29 = vmul.f32 %v4019_v15, %v1624_v13 }
  0xb4   :  { %3515 = vmatprep.subr.msk.mxu0 %vm41_vm0, %v1652_v28  ;;  %3518 = vmatprep.subr.msk.mxu1 %vm41_vm0, %v1654_v11 }
  0xb5   :  { %3516 = vmatpush1.msk.msra.mxu0 %vm41_vm0, %v1651_v30  ;;  %3519 = vmatpush1.msk.msra.mxu1 %vm41_vm0, %v1653_v29 }
  0xb6   :  { %3517 = vmatmul.mubr.msk.f32.vlgmr.msra.gmra.mxu0 %vm37_vm1, %v3514_v31  ;;  %3520 = vmatmul.mubr.msk.f32.vlgmr.msra.gmra.mxu1 %vm37_vm1, %v3514_v31 }
  0xb7   :  { %1925 = vmatprep.mubr.f32.mxu0 %v4298_v2  ;;  %1996 = vmatprep.mubr.f32.mxu1 %v4298_v2 }
  0xbd   :  { %v31_v63 = vpop.permute.xlu0 %30 }
  0xc7   :  { %v187_v32 = vpop.f32.mrf.mxu1  ;;  %v116_v33 = vpop.f32.mrf.mxu0 }
  0xc8   :  { %v188_v23 = vadd.f32 %v187_v32, %v31_v63  ;;  %v117_v12 = vadd.f32 %v116_v33, %v31_v63 }
  0xc9   :  { %v189_v34 = vpop.f32.mrf.mxu1  ;;  %v118_v46 = vpop.f32.mrf.mxu0 }
  0xca   :  { %v190_v13 = vadd.f32 %v189_v34, %v31_v63  ;;  %v119_v28 = vadd.f32 %v118_v46, %v31_v63 }
 0x13e   :  { %v388_v47 = vpop.f32.mrf.mxu1  ;;  %v317_v48 = vpop.f32.mrf.mxu0 }
 0x13f   :  { %v395_v11 = vadd.f32 %v388_v47, %v188_v23  ;;  %v393_v30 = vadd.f32 %v317_v48, %v117_v12 }
 0x140   :  { %v390_v49 = vpop.f32.mrf.mxu1  ;;  %v319_v50 = vpop.f32.mrf.mxu0 }
 0x141   :  { %v396_v31 = vadd.f32 %v390_v49, %v190_v13  ;;  %v394_v4 = vadd.f32 %v319_v50, %v119_v28 }
 0x145   :  { %v520_v53 = vpop.f32.mrf.mxu0 }
 0x146   :  { %v591_v52 = vpop.f32.mrf.mxu1  ;;  %v596_v15 = vadd.f32 %v520_v53, %v393_v30 }
 0x147   :  { %v522_v55 = vpop.f32.mrf.mxu0  ;;  %v598_v3 = vadd.f32 %v591_v52, %v395_v11 }
 0x148   :  { %v593_v54 = vpop.f32.mrf.mxu1  ;;  %v597_v37 = vadd.f32 %v522_v55, %v394_v4 }
 0x149   :  { %v599_v9 = vadd.f32 %v593_v54, %v396_v31 }
 0x14d   :  { %v723_v60 = vpop.f32.mrf.mxu0 }
 0x14e   :  { %v794_v57 = vpop.f32.mrf.mxu1  ;;  %v799_v32 = vadd.f32 %v723_v60, %v596_v15 }
 0x14f   :  { %v725_v62 = vpop.f32.mrf.mxu0  ;;  %v801_v35 = vadd.f32 %v794_v57, %v598_v3 }
 0x150   :  { %v796_v61 = vpop.f32.mrf.mxu1  ;;  %v800_v47 = vadd.f32 %v725_v62, %v597_v37 }
 0x151   :  { %v802_v39 = vadd.f32 %v796_v61, %v599_v9 }
 0x155   :  { %v926_v27 = vpop.f32.mrf.mxu0 }
 0x156   :  { %v997_v17 = vpop.f32.mrf.mxu1  ;;  %v1002_v46 = vadd.f32 %v926_v27, %v799_v32 }
 0x157   :  { %v928_v29 = vpop.f32.mrf.mxu0  ;;  %v1004_v0 = vadd.f32 %v997_v17, %v801_v35 }
 0x158   :  { %v999_v14 = vpop.f32.mrf.mxu1  ;;  %v1003_v52 = vadd.f32 %v928_v29, %v800_v47 }
 0x159   :  { %v1005_v63 = vadd.f32 %v999_v14, %v802_v39 }
 0x15e   :  { %v1200_v2 = vpop.f32.mrf.mxu1  ;;  %v1129_v7 = vpop.f32.mrf.mxu0 }
 0x15f   :  { %v1207_v23 = vadd.f32 %v1200_v2, %v1004_v0  ;;  %v1205_v53 = vadd.f32 %v1129_v7, %v1002_v46 }
 0x160   :  { %v1202_v16 = vpop.f32.mrf.mxu1  ;;  %v1131_v36 = vpop.f32.mrf.mxu0 }
 0x161   :  { %v1208_v54 = vadd.f32 %v1202_v16, %v1005_v63  ;;  %v1206_v4 = vadd.f32 %v1131_v36, %v1003_v52 }
 0x166   :  { %v1332_v33 = vpop.f32.mrf.mxu0  ;;  %v1403_v34 = vpop.f32.mrf.mxu1 }
 0x167   :  { %v1408_v13 = vadd.f32 %v1332_v33, %v1205_v53  ;;  %v1410_v3 = vadd.f32 %v1403_v34, %v1207_v23 }
 0x168   :  { %v1334_v48 = vpop.f32.mrf.mxu0  ;;  %v1405_v49 = vpop.f32.mrf.mxu1 }
 0x169   :  { %v1409_v60 = vadd.f32 %v1334_v48, %v1206_v4  ;;  %v1411_v35 = vadd.f32 %v1405_v49, %v1208_v54  ;;  %v3521_v54 = vld [vmem:[%s4295_s4 + $0x10] sm:$0xf] }
 0x16e   :  { %v1535_v50 = vpop.f32.mrf.mxu0  ;;  %v1606_v12 = vpop.f32.mrf.mxu1 }
 0x16f   :  { %v1611_v9 = vadd.f32 %v1535_v50, %v1408_v13  ;;  %v1613_v57 = vadd.f32 %v1606_v12, %v1410_v3  ;;  %v4322_v13 = vmov 0.0   ;;  %v1840_v3 = vld [vmem:[%s4296_s5] sm:$0xf] }
 0x170   :  { %v1537_v55 = vpop.f32.mrf.mxu0  ;;  %v1608_v15 = vpop.f32.mrf.mxu1 }
 0x171   :  { %v1612_v17 = vadd.f32 %v1537_v55, %v1409_v60  ;;  %v1614_v2 = vadd.f32 %v1608_v15, %v1411_v35 }
 0x176   :  { %v1738_v37 = vpop.f32.mrf.mxu0  ;;  %v1809_v61 = vpop.f32.mrf.mxu1 }
 0x177   :  { %v1814_v39 = vadd.f32 %v1738_v37, %v1611_v9  ;;  %v1816_v62 = vadd.f32 %v1809_v61, %v1613_v57 }
 0x178   :  { %v1740_v0 = vpop.f32.mrf.mxu0  ;;  %v1811_v27 = vpop.f32.mrf.mxu1 }
 0x179   :  { %v1822_v14 = vmul.f32 0.70710677, %v1814_v39  ;;  %v1824_v7 = vmul.f32 0.70710677, %v1816_v62  ;;  %v1815_v16 = vadd.f32 %v1740_v0, %v1612_v17  ;;  %v1817_v11 = vadd.f32 %v1811_v27, %v1614_v2 }
 0x17a   :  { %v1818_v31 = vmul.f32 0.5, %v1814_v39  ;;  %v1820_v33 = vmul.f32 0.5, %v1816_v62 }
 0x17b   :  { %3596 = verf.f32 %v1822_v14  ;;  %v1823_v36 = vmul.f32 0.70710677, %v1815_v16  ;;  %v1825_v28 = vmul.f32 0.70710677, %v1817_v11  ;;  %v1819_v49 = vmul.f32 0.5, %v1815_v16 }
 0x17c   :  { %3598 = verf.f32 %v1824_v7  ;;  %v1821_v52 = vmul.f32 0.5, %v1817_v11 }
 0x17d   :  { %3600 = verf.f32 %v1823_v36 }
 0x17e   :  { %3602 = verf.f32 %v1825_v28 }
 0x188   :  { %v3597_v29 = vpop.eup %3596 }
 0x189   :  { %v3599_v30 = vpop.eup %3598  ;;  %v1830_v32 = vadd.f32 1.0, %v3597_v29  ;;  %v3534_v29 = vld [vmem:[%s4295_s4 + $0x4] sm:$0xf] }
 0x18a   :  { %v1832_v34 = vadd.f32 1.0, %v3599_v30  ;;  %v3601_v47 = vpop.eup %3600 }
 0x18b   :  { %v1834_v46 = vmul.f32 %v1830_v32, %v1818_v31  ;;  %v3603_v63 = vpop.eup %3602  ;;  %v1831_v23 = vadd.f32 1.0, %v3601_v47 }
 0x18c   :  { %v1836_v48 = vmul.f32 %v1832_v34, %v1820_v33  ;;  %v1833_v50 = vadd.f32 1.0, %v3603_v63 }
 0x18d   :  { %2003 = vrot.lane.b32.xlu1 %v1834_v46, %s3607_s25  ;;  %v1835_v12 = vmul.f32 %v1831_v23, %v1819_v49 }
 0x18e   :  { %2007 = vrot.lane.b32.xlu0 %v1836_v48, %s3607_s25  ;;  %v1837_v53 = vmul.f32 %v1833_v50, %v1821_v52 }
 0x18f   :  { %3522 = vmatprep.subr.msk.mxu0 %vm41_vm0, %v1835_v12 }
 0x190   :  { %3525 = vmatprep.subr.msk.mxu1 %vm41_vm0, %v1837_v53  ;;  %3523 = vmatpush1.msk.msra.mxu0 %vm41_vm0, %v1834_v46 }
 0x191   :  { %3526 = vmatpush1.msk.msra.mxu1 %vm41_vm0, %v1836_v48  ;;  %2005 = vrot.lane.b32.xlu1 %v1835_v12, %s3607_s25 }
 0x192   :  { %2181 = vrot.lane.b32.xlu0 %v1834_v46, %s3608_s28  ;;  %3527 = vmatmul.mubr.msk.f32.vlgmr.msra.gmra.mxu1 %vm37_vm1, %v3521_v54 }
 0x193   :  { %3524 = vmatmul.mubr.msk.f32.vlgmr.msra.gmra.mxu0 %vm37_vm1, %v3521_v54  ;;  %2170 = vmatprep.mubr.f32.mxu1 %v4322_v13 }
 0x194   :  { %2099 = vmatprep.mubr.f32.mxu0 %v4322_v13 }
 0x195   :  { %2009 = vrot.lane.b32.xlu1 %v1837_v53, %s3607_s25 }
 0x196   :  { %2185 = vrot.lane.b32.xlu0 %v1836_v48, %s3608_s28 }
 0x199   :  { %2183 = vrot.lane.b32.xlu1 %v1835_v12, %s3608_s28 }
 0x19a   :  { %2360 = vrot.lane.b32.xlu0 %v1834_v46, %s3609_s29 }
 0x19d   :  { %2187 = vrot.lane.b32.xlu1 %v1837_v53, %s3608_s28 }
 0x19e   :  { %2364 = vrot.lane.b32.xlu0 %v1836_v48, %s3609_s29 }
 0x1a1   :  { %2362 = vrot.lane.b32.xlu1 %v1835_v12, %s3609_s29 }
 0x1a2   :  { %2539 = vrot.lane.b32.xlu0 %v1834_v46, %s3610_s30 }
 0x1a5   :  { %2366 = vrot.lane.b32.xlu1 %v1837_v53, %s3609_s29 }
 0x1a6   :  { %2543 = vrot.lane.b32.xlu0 %v1836_v48, %s3610_s30 }
 0x1a9   :  { %2541 = vrot.lane.b32.xlu1 %v1835_v12, %s3610_s30 }
 0x1aa   :  { %2718 = vrot.lane.b32.xlu0 %v1834_v46, %s3611_s7 }
 0x1ad   :  { %2545 = vrot.lane.b32.xlu1 %v1837_v53, %s3610_s30 }
 0x1ae   :  { %2722 = vrot.lane.b32.xlu0 %v1836_v48, %s3611_s7 }
 0x1b1   :  { %2720 = vrot.lane.b32.xlu1 %v1835_v12, %s3611_s7 }
 0x1b2   :  { %2897 = vrot.lane.b32.xlu0 %v1834_v46, %s3612_s8 }
 0x1b5   :  { %2724 = vrot.lane.b32.xlu1 %v1837_v53, %s3611_s7 }
 0x1b6   :  { %2901 = vrot.lane.b32.xlu0 %v1836_v48, %s3612_s8 }
 0x1b9   :  { %2899 = vrot.lane.b32.xlu1 %v1835_v12, %s3612_s8 }
 0x1ba   :  { %3076 = vrot.lane.b32.xlu0 %v1834_v46, %s3613_s9 }
 0x1bd   :  { %2903 = vrot.lane.b32.xlu1 %v1837_v53, %s3612_s8 }
 0x1be   :  { %3080 = vrot.lane.b32.xlu0 %v1836_v48, %s3613_s9 }
 0x1c1   :  { %3078 = vrot.lane.b32.xlu1 %v1835_v12, %s3613_s9 }
 0x1c2   :  { %3255 = vrot.lane.b32.xlu0 %v1834_v46, %s3615_s10 }
 0x1c5   :  { %3082 = vrot.lane.b32.xlu1 %v1837_v53, %s3613_s9 }
 0x1c6   :  { %3259 = vrot.lane.b32.xlu0 %v1836_v48, %s3615_s10  ;;  %v3541_v48 = vld [vmem:[%s4295_s4 + $0x8] sm:$0xf] }
 0x1c9   :  { %3257 = vrot.lane.b32.xlu1 %v1835_v12, %s3615_s10 }
 0x1ca   :  { %1843 = vperm.xlu0 %3593, %v1840_v3  }
 0x1cd   :  { %3261 = vrot.lane.b32.xlu1 %v1837_v53, %s3615_s10 }
 0x1ff   :  { %v2004_v4 = vpop.permute.xlu1 %2003 }
 0x200   :  { %v2008_v55 = vpop.permute.xlu0 %2007 }
 0x203   :  { %v2006_v9 = vpop.permute.xlu1 %2005 }
 0x204   :  { %v2182_v15 = vpop.permute.xlu0 %2181  ;;  %v2013_v57 = vsel %vm204_vm2, %v2004_v4, %v2006_v9  ;;  %v2012_v37 = vsel %vm204_vm2, %v2006_v9, %v2008_v55 }
 0x205   :  { %v2016_v60 = vmul.f32 %v2013_v57, %v3751_v21  ;;  %v2019_v21 = vld [vmem:[%s4295_s4] sm:$0xf]  ;;  %v2017_v0 = vmul.f32 %v2012_v37, %v3754_v22 }
 0x207   :  { %v2010_v61 = vpop.permute.xlu1 %2009  ;;  %3528 = vmatprep.subr.msk.mxu0 %vm41_vm0, %v2016_v60 }
 0x208   :  { %v2186_v35 = vpop.permute.xlu0 %2185  ;;  %v2011_v39 = vsel %vm204_vm2, %v2008_v55, %v2010_v61  ;;  %v2014_v62 = vsel %vm204_vm2, %v2010_v61, %v2004_v4  ;;  %v3548_v4 = vld [vmem:[%s4295_s4 + $0xc] sm:$0xf] }
 0x209   :  { %v2015_v17 = vmul.f32 %v2014_v62, %v3745_v19  ;;  %v2018_v2 = vmul.f32 %v2011_v39, %v3748_v20 }
 0x20b   :  { %3531 = vmatprep.subr.msk.mxu1 %vm41_vm0, %v2018_v2  ;;  %v2184_v14 = vpop.permute.xlu1 %2183  ;;  %3529 = vmatpush1.msk.msra.mxu0 %vm41_vm0, %v2015_v17 }
 0x20c   :  { %v2361_v27 = vpop.permute.xlu0 %2360  ;;  %v2191_v7 = vsel %vm405_vm3, %v2182_v15, %v2184_v14  ;;  %3530 = vmatmul.mubr.msk.f32.vlgmr.msra.gmra.mxu0 %vm37_vm1, %v2019_v21  ;;  %3532 = vmatpush1.msk.msra.mxu1 %vm41_vm0, %v2017_v0  ;;  %v2190_v22 = vsel %vm405_vm3, %v2184_v14, %v2186_v35  ;;  %v3562_v0 = vld [vmem:[%s4295_s4 + $0x18] sm:$0xf] }
 0x20d   :  { %v2194_v19 = vmul.f32 %v2191_v7, %v3758_v25  ;;  %3533 = vmatmul.mubr.msk.f32.vlgmr.msra.gmra.mxu1 %vm37_vm1, %v2019_v21  ;;  %2278 = vmatprep.mubr.f32.mxu0 %v4322_v13  ;;  %v2195_v30 = vmul.f32 %v2190_v22, %v3786_v40 }
 0x20e   :  { %2349 = vmatprep.mubr.f32.mxu1 %v4322_v13 }
 0x20f   :  { %v2188_v16 = vpop.permute.xlu1 %2187  ;;  %3535 = vmatprep.subr.msk.mxu0 %vm41_vm0, %v2194_v19  ;;  %v4323_v19 = vld [vmem:[#allocation4_spill] sm:$0xff] }
 0x210   :  { %v2365_v20 = vpop.permute.xlu0 %2364  ;;  %v2189_v11 = vsel %vm405_vm3, %v2186_v35, %v2188_v16  ;;  %v2192_v36 = vsel %vm405_vm3, %v2188_v16, %v2182_v15  ;;  %v3555_v35 = vld [vmem:[%s4295_s4 + $0x14] sm:$0xf] }
 0x211   :  { %v2193_v25 = vmul.f32 %v2192_v36, %v3782_v38  ;;  %v2196_v28 = vmul.f32 %v2189_v11, %v3789_v41 }
 0x213   :  { %3538 = vmatprep.subr.msk.mxu1 %vm41_vm0, %v2196_v28  ;;  %v2363_v32 = vpop.permute.xlu1 %2362  ;;  %3536 = vmatpush1.msk.msra.mxu0 %vm41_vm0, %v2193_v25  ;;  %v4324_v25 = vld [vmem:[#allocation8_spill] sm:$0xff]  ;;  %v4325_v28 = vld [vmem:[#allocation6_spill] sm:$0xff] }
 0x214   :  { %v2540_v31 = vpop.permute.xlu0 %2539  ;;  %v2370_v33 = vsel %vm608_vm4, %v2361_v27, %v2363_v32  ;;  %3537 = vmatmul.mubr.msk.f32.vlgmr.msra.gmra.mxu0 %vm37_vm1, %v3534_v29  ;;  %3539 = vmatpush1.msk.msra.mxu1 %vm41_vm0, %v2195_v30  ;;  %v2369_v41 = vsel %vm608_vm4, %v2363_v32, %v2365_v20  ;;  %v3569_v30 = vld [vmem:[%s4295_s4 + $0x1c] sm:$0xf] }
 0x215   :  { %v2373_v38 = vmul.f32 %v2370_v33, %v3810_v51  ;;  %3540 = vmatmul.mubr.msk.f32.vlgmr.msra.gmra.mxu1 %vm37_vm1, %v3534_v29  ;;  %2457 = vmatprep.mubr.f32.mxu0 %v4322_v13  ;;  %v2374_v49 = vmul.f32 %v2369_v41, %v3826_v58  ;;  %v4327_v41 = vld [vmem:[#allocation5_spill] sm:$0xff] }
 0x216   :  { %2528 = vmatprep.mubr.f32.mxu1 %v4322_v13 }
 0x217   :  { %v2367_v34 = vpop.permute.xlu1 %2366  ;;  %3542 = vmatprep.subr.msk.mxu0 %vm41_vm0, %v2373_v38  ;;  %v4326_v38 = vld [vmem:[#allocation7_spill] sm:$0xff] }
 0x218   :  { %v2544_v40 = vpop.permute.xlu0 %2543  ;;  %v2368_v47 = vsel %vm608_vm4, %v2365_v20, %v2367_v34  ;;  %v2371_v46 = vsel %vm608_vm4, %v2367_v34, %v2361_v27 }
 0x219   :  { %v2372_v51 = vmul.f32 %v2371_v46, %v3821_v56  ;;  %v2375_v63 = vmul.f32 %v2368_v47, %v3829_v59 }
 0x21b   :  { %3545 = vmatprep.subr.msk.mxu1 %vm41_vm0, %v2375_v63  ;;  %v2542_v52 = vpop.permute.xlu1 %2541  ;;  %3543 = vmatpush1.msk.msra.mxu0 %vm41_vm0, %v2372_v51 }
 0x21c   :  { %v2719_v23 = vpop.permute.xlu0 %2718  ;;  %v2549_v50 = vsel %vm811_vm5, %v2540_v31, %v2542_v52  ;;  %3544 = vmatmul.mubr.msk.f32.vlgmr.msra.gmra.mxu0 %vm37_vm1, %v3541_v48  ;;  %3546 = vmatpush1.msk.msra.mxu1 %vm41_vm0, %v2374_v49  ;;  %v2548_v59 = vsel %vm811_vm5, %v2542_v52, %v2544_v40 }
 0x21d   :  { %v2552_v56 = vmul.f32 %v2549_v50, %v3849_v8  ;;  %3547 = vmatmul.mubr.msk.f32.vlgmr.msra.gmra.mxu1 %vm37_vm1, %v3541_v48  ;;  %2636 = vmatprep.mubr.f32.mxu0 %v4322_v13  ;;  %v2553_v55 = vmul.f32 %v2548_v59, %v3865_v24  ;;  %v4328_v48 = vld [vmem:[#allocation12_spill] sm:$0xff]  ;;  %v3576_v50 = vld [vmem:[%s4295_s4 + $0x20] sm:$0xf] }
 0x21e   :  { %2707 = vmatprep.mubr.f32.mxu1 %v4322_v13 }
 0x21f   :  { %v2546_v12 = vpop.permute.xlu1 %2545  ;;  %3549 = vmatprep.subr.msk.mxu0 %vm41_vm0, %v2552_v56 }
 0x220   :  { %v2723_v58 = vpop.permute.xlu0 %2722  ;;  %v2547_v53 = vsel %vm811_vm5, %v2544_v40, %v2546_v12  ;;  %v2550_v54 = vsel %vm811_vm5, %v2546_v12, %v2540_v31  ;;  %v4330_v12 = vld [vmem:[#allocation11_spill] sm:$0xff] }
 0x221   :  { %v2551_v8 = vmul.f32 %v2550_v54, %v3860_v18  ;;  %v2554_v3 = vmul.f32 %v2547_v53, %v3868_v26  ;;  %v4331_v54 = vld [vmem:[#allocation9_spill] sm:$0xff] }
 0x223   :  { %3552 = vmatprep.subr.msk.mxu1 %vm41_vm0, %v2554_v3  ;;  %v2721_v9 = vpop.permute.xlu1 %2720  ;;  %3550 = vmatpush1.msk.msra.mxu0 %vm41_vm0, %v2551_v8 }
 0x224   :  { %v2898_v15 = vpop.permute.xlu0 %2897  ;;  %v2727_v57 = vsel %vm1014_vm6, %v2721_v9, %v2723_v58  ;;  %v2728_v18 = vsel %vm1014_vm6, %v2719_v23, %v2721_v9  ;;  %3551 = vmatmul.mubr.msk.f32.vlgmr.msra.gmra.mxu0 %vm37_vm1, %v3548_v4  ;;  %3553 = vmatpush1.msk.msra.mxu1 %vm41_vm0, %v2553_v55 }
 0x225   :  { %v2730_v26 = vmul.f32 %v2728_v18, %v3906_v45  ;;  %v2731_v24 = vmul.f32 %v2727_v57, %v3898_v43  ;;  %3554 = vmatmul.mubr.msk.f32.vlgmr.msra.gmra.mxu1 %vm37_vm1, %v3548_v4  ;;  %2815 = vmatprep.mubr.f32.mxu0 %v4322_v13 }
 0x226   :  { %2886 = vmatprep.mubr.f32.mxu1 %v4322_v13 }
 0x227   :  { %v2725_v37 = vpop.permute.xlu1 %2724  ;;  %3556 = vmatprep.subr.msk.mxu0 %vm41_vm0, %v2731_v24 }
 0x228   :  { %v2902_v60 = vpop.permute.xlu0 %2901  ;;  %v2726_v61 = vsel %vm1014_vm6, %v2723_v58, %v2725_v37  ;;  %v2729_v43 = vsel %vm1014_vm6, %v2725_v37, %v2719_v23  ;;  %3557 = vmatpush1.msk.msra.mxu0 %vm41_vm0, %v2730_v26  ;;  %v4329_v23 = vld [vmem:[#allocation10_spill] sm:$0xff] }
 0x229   :  { %v2732_v45 = vmul.f32 %v2726_v61, %v3901_v44  ;;  %v2733_v39 = vmul.f32 %v2729_v43, %v3895_v42  ;;  %3558 = vmatmul.mubr.msk.f32.vlgmr.msra.gmra.mxu0 %vm37_vm1, %v3555_v35 }
 0x22a   :  { %2994 = vmatprep.mubr.f32.mxu0 %v4322_v13 }
 0x22b   :  { %3559 = vmatprep.subr.msk.mxu1 %vm41_vm0, %v2733_v39  ;;  %v2900_v17 = vpop.permute.xlu1 %2899 }
 0x22c   :  { %v3077_v62 = vpop.permute.xlu0 %3076  ;;  %v2906_v2 = vsel %vm1217_vm7, %v2900_v17, %v2902_v60  ;;  %v2907_v21 = vsel %vm1217_vm7, %v2898_v15, %v2900_v17  ;;  %3560 = vmatpush1.msk.msra.mxu1 %vm41_vm0, %v2732_v45 }
 0x22d   :  { %v2909_v44 = vmul.f32 %v2907_v21, %v3944_v6  ;;  %v2910_v42 = vmul.f32 %v2906_v2, %v3937_v1  ;;  %3561 = vmatmul.mubr.msk.f32.vlgmr.msra.gmra.mxu1 %vm37_vm1, %v3555_v35 }
 0x22e   :  { %3065 = vmatprep.mubr.f32.mxu1 %v4322_v13 }
 0x22f   :  { %v2904_v14 = vpop.permute.xlu1 %2903  ;;  %3563 = vmatprep.subr.msk.mxu0 %vm41_vm0, %v2910_v42 }
 0x230   :  { %v3081_v27 = vpop.permute.xlu0 %3080  ;;  %v2905_v7 = vsel %vm1217_vm7, %v2902_v60, %v2904_v14  ;;  %v2908_v6 = vsel %vm1217_vm7, %v2904_v14, %v2898_v15  ;;  %3564 = vmatpush1.msk.msra.mxu0 %vm41_vm0, %v2909_v44 }
 0x231   :  { %v2911_v1 = vmul.f32 %v2905_v7, %v3940_v5  ;;  %v2912_v20 = vmul.f32 %v2908_v6, %v4323_v19  ;;  %3565 = vmatmul.mubr.msk.f32.vlgmr.msra.gmra.mxu0 %vm37_vm1, %v3562_v0 }
 0x232   :  { %3173 = vmatprep.mubr.f32.mxu0 %v4322_v13 }
 0x233   :  { %3566 = vmatprep.subr.msk.mxu1 %vm41_vm0, %v2912_v20  ;;  %v3079_v22 = vpop.permute.xlu1 %3078 }
 0x234   :  { %v3085_v16 = vsel %vm1420_vm8, %v3079_v22, %v3081_v27  ;;  %v3086_v11 = vsel %vm1420_vm8, %v3077_v62, %v3079_v22  ;;  %3567 = vmatpush1.msk.msra.mxu1 %vm41_vm0, %v2911_v1  ;;  %v3256_v36 = vpop.permute.xlu0 %3255 }
 0x235   :  { %v3088_v5 = vmul.f32 %v3086_v11, %v4324_v25  ;;  %v3089_v29 = vmul.f32 %v3085_v16, %v4325_v28  ;;  %3568 = vmatmul.mubr.msk.f32.vlgmr.msra.gmra.mxu1 %vm37_vm1, %v3562_v0 }
 0x236   :  { %3244 = vmatprep.mubr.f32.mxu1 %v4322_v13 }
 0x237   :  { %v3083_v31 = vpop.permute.xlu1 %3082  ;;  %3570 = vmatprep.subr.msk.mxu0 %vm41_vm0, %v3089_v29 }
 0x238   :  { %v3084_v32 = vsel %vm1420_vm8, %v3081_v27, %v3083_v31  ;;  %v3087_v33 = vsel %vm1420_vm8, %v3083_v31, %v3077_v62  ;;  %3571 = vmatpush1.msk.msra.mxu0 %vm41_vm0, %v3088_v5  ;;  %v3260_v47 = vpop.permute.xlu0 %3259 }
 0x239   :  { %v3090_v40 = vmul.f32 %v3084_v32, %v4326_v38  ;;  %v3091_v34 = vmul.f32 %v3087_v33, %v4327_v41  ;;  %3572 = vmatmul.mubr.msk.f32.vlgmr.msra.gmra.mxu0 %vm37_vm1, %v3569_v30 }
 0x23a   :  { %3352 = vmatprep.mubr.f32.mxu0 %v4322_v13 }
 0x23b   :  { %3573 = vmatprep.subr.msk.mxu1 %vm41_vm0, %v3091_v34  ;;  %v3258_v46 = vpop.permute.xlu1 %3257 }
 0x23c   :  { %v3264_v51 = vsel %vm1623_vm9, %v3258_v46, %v3260_v47  ;;  %v3265_v63 = vsel %vm1623_vm9, %v3256_v36, %v3258_v46  ;;  %3574 = vmatpush1.msk.msra.mxu1 %vm41_vm0, %v3090_v40 }
 0x23d   :  { %v3267_v49 = vmul.f32 %v3265_v63, %v4328_v48  ;;  %v3268_v52 = vmul.f32 %v3264_v51, %v4329_v23  ;;  %3575 = vmatmul.mubr.msk.f32.vlgmr.msra.gmra.mxu1 %vm37_vm1, %v3569_v30 }
 0x23e   :  { %3423 = vmatprep.mubr.f32.mxu1 %v4322_v13 }
 0x23f   :  { %v3262_v56 = vpop.permute.xlu1 %3261  ;;  %3577 = vmatprep.subr.msk.mxu0 %vm41_vm0, %v3268_v52 }
 0x240   :  { %v3263_v58 = vsel %vm1623_vm9, %v3260_v47, %v3262_v56  ;;  %v3266_v59 = vsel %vm1623_vm9, %v3262_v56, %v3256_v36  ;;  %3578 = vmatpush1.msk.msra.mxu0 %vm41_vm0, %v3267_v49 }
 0x241   :  { %v3269_v53 = vmul.f32 %v3263_v58, %v4330_v12  ;;  %v3270_v8 = vmul.f32 %v3266_v59, %v4331_v54  ;;  %3579 = vmatmul.mubr.msk.f32.vlgmr.msra.gmra.mxu0 %vm37_vm1, %v3576_v50 }
 0x243   :  { %3580 = vmatprep.subr.msk.mxu1 %vm41_vm0, %v3270_v8 }
 0x244   :  { %3581 = vmatpush1.msk.msra.mxu1 %vm41_vm0, %v3269_v53 }
 0x245   :  { %3582 = vmatmul.mubr.msk.f32.vlgmr.msra.gmra.mxu1 %vm37_vm1, %v3576_v50  ;;  %v1844_v2 = vpop.permute.xlu0 %1843 }
 0x252   :  { %v1998_v4 = vpop.f32.mrf.mxu1 }
 0x253   :  { %v1927_v13 = vpop.f32.mrf.mxu0  ;;  %v1999_v6 = vadd.f32 %v1998_v4, %v1844_v2 }
 0x254   :  { %v2000_v10 = vpop.f32.mrf.mxu1  ;;  %v1928_v44 = vadd.f32 %v1927_v13, %v1844_v2 }
 0x255   :  { %v1929_v3 = vpop.f32.mrf.mxu0  ;;  %v2001_v22 = vadd.f32 %v2000_v10, %v1844_v2 }
 0x256   :  { %v1930_v27 = vadd.f32 %v1929_v3, %v1844_v2 }
 0x2cc   :  { %v2101_v55 = vpop.f32.mrf.mxu0 }
 0x2cd   :  { %v2172_v9 = vpop.f32.mrf.mxu1  ;;  %v2177_v14 = vadd.f32 %v2101_v55, %v1928_v44 }
 0x2ce   :  { %v2103_v15 = vpop.f32.mrf.mxu0  ;;  %v2179_v16 = vadd.f32 %v2172_v9, %v1999_v6  ;;  %v3604_v9 = vld [vmem:[%s4291_s1] sm:$0xff] }
 0x2cf   :  { %v2174_v18 = vpop.f32.mrf.mxu1  ;;  %v2178_v1 = vadd.f32 %v2103_v15, %v1930_v27 }
 0x2d0   :  { %v2180_v28 = vadd.f32 %v2174_v18, %v2001_v22  ;;  %v4332_v18 = vld [vmem:[#allocation3_spill] sm:$0xff] }
 0x2d4   :  { %v2280_v57 = vpop.f32.mrf.mxu0 }
 0x2d5   :  { %v2351_v24 = vpop.f32.mrf.mxu1  ;;  %v2356_v19 = vadd.f32 %v2280_v57, %v2177_v14 }
 0x2d6   :  { %v2282_v26 = vpop.f32.mrf.mxu0  ;;  %v2358_v29 = vadd.f32 %v2351_v24, %v2179_v16 }
 0x2d7   :  { %v2353_v35 = vpop.f32.mrf.mxu1  ;;  %v2357_v11 = vadd.f32 %v2282_v26, %v2178_v1 }
 0x2d8   :  { %v2359_v33 = vadd.f32 %v2353_v35, %v2180_v28 }
 0x2dc   :  { %v2459_v60 = vpop.f32.mrf.mxu0 }
 0x2dd   :  { %v2530_v61 = vpop.f32.mrf.mxu1  ;;  %v2535_v36 = vadd.f32 %v2459_v60, %v2356_v19 }
 0x2de   :  { %v2461_v37 = vpop.f32.mrf.mxu0  ;;  %v2537_v38 = vadd.f32 %v2530_v61, %v2358_v29  ;;  %v3605_v61 = vld [vmem:[%s4291_s1 + $0x8] sm:$0xff] }
 0x2df   :  { %v2532_v45 = vpop.f32.mrf.mxu1  ;;  %v2536_v30 = vadd.f32 %v2461_v37, %v2357_v11 }
 0x2e0   :  { %v2538_v47 = vadd.f32 %v2532_v45, %v2359_v33  ;;  %v4333_v45 = vld [vmem:[#allocation2_spill] sm:$0xff] }
 0x2e4   :  { %v2638_v43 = vpop.f32.mrf.mxu0 }
 0x2e5   :  { %v2709_v62 = vpop.f32.mrf.mxu1  ;;  %v2714_v31 = vadd.f32 %v2638_v43, %v2535_v36 }
 0x2e6   :  { %v2640_v39 = vpop.f32.mrf.mxu0  ;;  %v2716_v46 = vadd.f32 %v2709_v62, %v2537_v38 }
 0x2e7   :  { %v2711_v21 = vpop.f32.mrf.mxu1  ;;  %v2715_v40 = vadd.f32 %v2640_v39, %v2536_v30 }
 0x2e8   :  { %v2717_v23 = vadd.f32 %v2711_v21, %v2538_v47 }
 0x2e9   :  { %v2817_v17 = vpop.f32.mrf.mxu0 }
 0x2ea   :  { %v2893_v41 = vadd.f32 %v2817_v17, %v2714_v31 }
 0x2eb   :  { %v2819_v42 = vpop.f32.mrf.mxu0 }
 0x2ec   :  { %v2894_v51 = vadd.f32 %v2819_v42, %v2715_v40 }
 0x2ed   :  { %v2888_v0 = vpop.f32.mrf.mxu1 }
 0x2ee   :  { %v2895_v52 = vadd.f32 %v2888_v0, %v2716_v46 }
 0x2ef   :  { %v2890_v20 = vpop.f32.mrf.mxu1 }
 0x2f0   :  { %v2896_v59 = vadd.f32 %v2890_v20, %v2717_v23 }
 0x2f1   :  { %v2996_v7 = vpop.f32.mrf.mxu0 }
 0x2f2   :  { %v3072_v63 = vadd.f32 %v2996_v7, %v2893_v41 }
 0x2f3   :  { %v2998_v25 = vpop.f32.mrf.mxu0 }
 0x2f4   :  { %v3073_v50 = vadd.f32 %v2998_v25, %v2894_v51 }
 0x2f5   :  { %v3067_v5 = vpop.f32.mrf.mxu1 }
 0x2f6   :  { %v3074_v12 = vadd.f32 %v3067_v5, %v2895_v52 }
 0x2f7   :  { %v3069_v34 = vpop.f32.mrf.mxu1 }
 0x2f8   :  { %v3075_v3 = vadd.f32 %v3069_v34, %v2896_v59 }
 0x2f9   :  { %v3175_v32 = vpop.f32.mrf.mxu0 }
 0x2fa   :  { %v3251_v56 = vadd.f32 %v3175_v32, %v3072_v63 }
 0x2fb   :  { %v3177_v48 = vpop.f32.mrf.mxu0 }
 0x2fc   :  { %v3252_v53 = vadd.f32 %v3177_v48, %v3073_v50 }
 0x2fd   :  { %v3246_v49 = vpop.f32.mrf.mxu1 }
 0x2fe   :  { %v3253_v4 = vadd.f32 %v3246_v49, %v3074_v12 }
 0x2ff   :  { %v3248_v8 = vpop.f32.mrf.mxu1 }
 0x300   :  { %v3254_v15 = vadd.f32 %v3248_v8, %v3075_v3 }
 0x301   :  { %v3354_v58 = vpop.f32.mrf.mxu0 }
 0x302   :  { %v3430_v54 = vadd.f32 %v3354_v58, %v3251_v56 }
 0x303   :  { %v3356_v13 = vpop.f32.mrf.mxu0 }
 0x304   :  { %v3431_v55 = vadd.f32 %v3356_v13, %v3252_v53  ;;  %v3434_v57 = vadd.f32 %v3604_v9, %v3430_v54 }
 0x305   :  { %v3425_v10 = vpop.f32.mrf.mxu1 }
 0x306   :  { %v3435_v26 = vadd.f32 %v3431_v55, %v4332_v18  ;;  %v3432_v24 = vadd.f32 %v3425_v10, %v3253_v4 }
 0x307   :  { %v3427_v60 = vpop.f32.mrf.mxu1 }
 0x308   :  { %v3442_v35 = vcombine.low %v3434_v57, %v3435_v26  ;;  %v3433_v37 = vadd.f32 %v3427_v60, %v3254_v15  ;;  %v3436_v43 = vadd.f32 %v3605_v61, %v3432_v24 }
 0x30a   :  { %3446 = vst [vmem:[%s4297_s6] sm:$0xff] %v3442_v35  ;;  %v3437_v39 = vadd.f32 %v3433_v37, %v4333_v45 }
 0x30c   :  { %v3443_v62 = vcombine.low %v3436_v43, %v3437_v39 }
 0x30e   :  { %3447 = vst [vmem:[%s4297_s6 + $0x8] sm:$0xff] %v3443_v62 }

</bundles_post_ra>
